<compile_context>
chip_gen: v6e
topology: v6e:2x2x1
jax: 0.10.0
libtpu: 0.0.40
codegen_flags: <defaults>
</compile_context>

<pallas_src>
import jax
import jax.numpy as jnp
from jax.experimental import pallas as pl
from jax.experimental.pallas import tpu as pltpu

N_EMBD = 384
NUM_HEADS = 6
HEAD_SIZE = N_EMBD // NUM_HEADS   # 64
BLOCK_SIZE = 128                  # max sequence length supported by the module
NEG_INF = -1e30


def _mha_kernel(x_ref, wq_ref, wk_ref, wv_ref, wo_ref, bo_ref, o_ref):
    # x_ref : (1, T, D) f32      wq/wk/wv/wo_ref : (D, D) bf16 (resident)
    # bo_ref: (1, D)   f32       o_ref           : (1, T, D) f32
    x = x_ref[0].astype(jnp.bfloat16)                                  # (T, D)
    T = x.shape[0]

    q = jnp.dot(x, wq_ref[...], preferred_element_type=jnp.float32)   # (T, D) f32
    k = jnp.dot(x, wk_ref[...], preferred_element_type=jnp.float32)
    v = jnp.dot(x, wv_ref[...], preferred_element_type=jnp.float32)

    scale = N_EMBD ** -0.5                                             # C**-0.5 (spec)
    row = jax.lax.broadcasted_iota(jnp.int32, (T, T), 0)
    col = jax.lax.broadcasted_iota(jnp.int32, (T, T), 1)
    causal = col <= row                                                # == tril mask

    head_outs = []
    for h in range(NUM_HEADS):                                         # static unroll
        lo, hi = h * HEAD_SIZE, (h + 1) * HEAD_SIZE
        qh = q[:, lo:hi].astype(jnp.bfloat16)                          # (T, hs)
        kh = k[:, lo:hi].astype(jnp.bfloat16)
        vh = v[:, lo:hi].astype(jnp.bfloat16)

        wei = jnp.dot(qh, kh.T, preferred_element_type=jnp.float32) * scale
        wei = jnp.where(causal, wei, NEG_INF)
        wei = wei - jnp.max(wei, axis=-1, keepdims=True)
        p = jnp.exp(wei)
        p = p * pl.reciprocal(jnp.sum(p, axis=-1, keepdims=True), approx=True)
        # Dropout(p=0.0) on attention weights == identity.
        head_outs.append(
            jnp.dot(p.astype(jnp.bfloat16), vh, preferred_element_type=jnp.float32))

    att = jnp.concatenate(head_outs, axis=-1).astype(jnp.bfloat16)     # (T, D)
    out = jnp.dot(att, wo_ref[...], preferred_element_type=jnp.float32) + bo_ref[...]
    # Dropout(p=0.0) on the projection output == identity.
    o_ref[0] = out.astype(o_ref.dtype)


def multi_head_attention_pallas(x, wq, wk, wv, wo, bo):
    """x: (B, T, n_embd) f32; wq/wk/wv/wo: (n_embd, n_embd); bo: (1, n_embd)."""
    B, T, D = x.shape
    assert D == N_EMBD and T <= BLOCK_SIZE and T % 8 == 0

    # MXU-friendly operand dtypes; f32 accumulation happens inside the kernel.
    wq = wq.astype(jnp.bfloat16)
    wk = wk.astype(jnp.bfloat16)
    wv = wv.astype(jnp.bfloat16)
    wo = wo.astype(jnp.bfloat16)
    bo = bo.astype(jnp.float32).reshape(1, D)

    flops = int(B * (4 * 2 * T * D * D + NUM_HEADS * 2 * (2 * T * T * HEAD_SIZE)))
    cost = pl.CostEstimate(
        flops=flops,
        transcendentals=int(B * NUM_HEADS * T * T),
        bytes_accessed=int(x.size * x.dtype.itemsize      # x in
                           + 4 * D * D * 2 + D * 4        # bf16 weights + f32 bias
                           + B * T * D * x.dtype.itemsize),  # out
    )

    return pl.pallas_call(
        _mha_kernel,
        out_shape=jax.ShapeDtypeStruct((B, T, D), x.dtype),
        grid_spec=pltpu.PrefetchScalarGridSpec(
            num_scalar_prefetch=0,
            grid=(B,),
            in_specs=[
                pl.BlockSpec((1, T, D), lambda b: (b, 0, 0)),   # x: one batch element
                pl.BlockSpec((D, D), lambda b: (0, 0)),         # Wq (resident)
                pl.BlockSpec((D, D), lambda b: (0, 0)),         # Wk (resident)
                pl.BlockSpec((D, D), lambda b: (0, 0)),         # Wv (resident)
                pl.BlockSpec((D, D), lambda b: (0, 0)),         # Wproj (resident)
                pl.BlockSpec((1, D), lambda b: (0, 0)),         # bproj (resident)
            ],
            out_specs=pl.BlockSpec((1, T, D), lambda b: (b, 0, 0)),
        ),
        compiler_params=pltpu.CompilerParams(
            dimension_semantics=("parallel",),    # batch shards across v7x's 2 TCs
        ),
        cost_estimate=cost,
    )(x, wq, wk, wv, wo, bo)


def multi_head_attention_ref(x, wq, wk, wv, wo, bo):
    """Pure-JAX f32 reference matching the PyTorch module."""
    B, T, D = x.shape
    scale = D ** -0.5
    q = (x @ wq).reshape(B, T, NUM_HEADS, HEAD_SIZE).transpose(0, 2, 1, 3)
    k = (x @ wk).reshape(B, T, NUM_HEADS, HEAD_SIZE).transpose(0, 2, 1, 3)
    v = (x @ wv).reshape(B, T, NUM_HEADS, HEAD_SIZE).transpose(0, 2, 1, 3)
    wei = jnp.einsum('bhqd,bhkd->bhqk', q, k) * scale
    mask = jnp.tril(jnp.ones((T, T), dtype=bool))
    wei = jnp.where(mask, wei, -jnp.inf)
    wei = jax.nn.softmax(wei, axis=-1)
    out = jnp.einsum('bhqk,bhkd->bhqd', wei, v)
    out = out.transpose(0, 2, 1, 3).reshape(B, T, D)
    return out @ wo + bo


if __name__ == "__main__":
    key = jax.random.PRNGKey(0)
    kx, kq, kk, kv, kw, kb = jax.random.split(key, 6)

    B, T = 2, 8
    x = jax.random.normal(kx, (B, T, N_EMBD), dtype=jnp.float32)

    # Deterministic PyTorch-Linear-style uniform init; stored (in, out).
    bound = 1.0 / (N_EMBD ** 0.5)
    wq = jax.random.uniform(kq, (N_EMBD, N_EMBD), jnp.float32, -bound, bound)
    wk = jax.random.uniform(kk, (N_EMBD, N_EMBD), jnp.float32, -bound, bound)
    wv = jax.random.uniform(kv, (N_EMBD, N_EMBD), jnp.float32, -bound, bound)
    wo = jax.random.uniform(kw, (N_EMBD, N_EMBD), jnp.float32, -bound, bound)
    bo = jax.random.uniform(kb, (1, N_EMBD), jnp.float32, -bound, bound)

    out = multi_head_attention_pallas(x, wq, wk, wv, wo, bo)
    jax.block_until_ready(out)
    assert out.shape == (B, T, N_EMBD)

    ref = multi_head_attention_ref(x, wq, wk, wv, wo, bo)
    # Kernel feeds the MXU bf16 operands (f32 accumulation) -> loose tolerance vs f32 ref.
    assert jnp.allclose(out, ref, atol=2e-2, rtol=2e-2), "mismatch vs reference"

    print("KERNEL_OK")
</pallas_src>

<mosaic_0001>
module attributes {stable_mosaic.version = 11 : i64} {
  func.func @_mha_kernel(%arg0: i32, %arg1: memref<1x8x384xf32, #tpu.memory_space<vmem>>, %arg2: memref<384x384xbf16, #tpu.memory_space<vmem>>, %arg3: memref<384x384xbf16, #tpu.memory_space<vmem>>, %arg4: memref<384x384xbf16, #tpu.memory_space<vmem>>, %arg5: memref<384x384xbf16, #tpu.memory_space<vmem>>, %arg6: memref<1x384xf32, #tpu.memory_space<vmem>>, %arg7: memref<1x8x384xf32, #tpu.memory_space<vmem>>) attributes {dimension_semantics = [#tpu.dimension_semantics<parallel>], iteration_bounds = array<i64: 2>, scalar_prefetch = 0 : i64, scratch_operands = 0 : i64, tpu.core_type = #tpu.core_type<tc>, window_params = [{transform_indices = @transform_0, window_bounds = array<i64: 1, 8, 384>}, {pipeline_mode = #tpu.pipeline_mode<synchronous>, transform_indices = @transform_1, window_bounds = array<i64: 384, 384>}, {pipeline_mode = #tpu.pipeline_mode<synchronous>, transform_indices = @transform_2, window_bounds = array<i64: 384, 384>}, {pipeline_mode = #tpu.pipeline_mode<synchronous>, transform_indices = @transform_3, window_bounds = array<i64: 384, 384>}, {pipeline_mode = #tpu.pipeline_mode<synchronous>, transform_indices = @transform_4, window_bounds = array<i64: 384, 384>}, {pipeline_mode = #tpu.pipeline_mode<synchronous>, transform_indices = @transform_5, window_bounds = array<i64: 1, 384>}, {transform_indices = @transform_6, window_bounds = array<i64: 1, 8, 384>}]} {
    %c0 = arith.constant 0 : index
    %c0_0 = arith.constant 0 : index
    %c0_1 = arith.constant 0 : index
    %0 = vector.load %arg1[%c0, %c0_0, %c0_1] : memref<1x8x384xf32, #tpu.memory_space<vmem>>, vector<1x8x384xf32>
    %1 = vector.shape_cast %0 : vector<1x8x384xf32> to vector<8x384xf32>
    %2 = arith.truncf %1 : vector<8x384xf32> to vector<8x384xbf16>
    %c0_2 = arith.constant 0 : index
    %c0_3 = arith.constant 0 : index
    %3 = vector.load %arg2[%c0_2, %c0_3] : memref<384x384xbf16, #tpu.memory_space<vmem>>, vector<384x384xbf16>
    %cst = arith.constant dense<0.000000e+00> : vector<8x384xf32>
    %4 = tpu.matmul %2, %3, %cst {dimension_numbers = #tpu.dot_dimension_numbers<[1], [0], [0], [1], [0, 0, 1, 1], [], []>} : vector<8x384xbf16>, vector<384x384xbf16>, vector<8x384xf32> -> vector<8x384xf32>
    %c0_4 = arith.constant 0 : index
    %c0_5 = arith.constant 0 : index
    %5 = vector.load %arg3[%c0_4, %c0_5] : memref<384x384xbf16, #tpu.memory_space<vmem>>, vector<384x384xbf16>
    %cst_6 = arith.constant dense<0.000000e+00> : vector<8x384xf32>
    %6 = tpu.matmul %2, %5, %cst_6 {dimension_numbers = #tpu.dot_dimension_numbers<[1], [0], [0], [1], [0, 0, 1, 1], [], []>} : vector<8x384xbf16>, vector<384x384xbf16>, vector<8x384xf32> -> vector<8x384xf32>
    %c0_7 = arith.constant 0 : index
    %c0_8 = arith.constant 0 : index
    %7 = vector.load %arg4[%c0_7, %c0_8] : memref<384x384xbf16, #tpu.memory_space<vmem>>, vector<384x384xbf16>
    %cst_9 = arith.constant dense<0.000000e+00> : vector<8x384xf32>
    %8 = tpu.matmul %2, %7, %cst_9 {dimension_numbers = #tpu.dot_dimension_numbers<[1], [0], [0], [1], [0, 0, 1, 1], [], []>} : vector<8x384xbf16>, vector<384x384xbf16>, vector<8x384xf32> -> vector<8x384xf32>
    %9 = tpu.iota {dimensions = array<i32: 0>} : vector<8x8xi32>
    %10 = tpu.iota {dimensions = array<i32: 1>} : vector<8x8xi32>
    %11 = arith.cmpi sle, %10, %9 : vector<8x8xi32>
    %12 = vector.extract_strided_slice %4 {offsets = [0, 0], sizes = [8, 64], strides = [1, 1]} : vector<8x384xf32> to vector<8x64xf32>
    %13 = arith.truncf %12 : vector<8x64xf32> to vector<8x64xbf16>
    %14 = vector.extract_strided_slice %6 {offsets = [0, 0], sizes = [8, 64], strides = [1, 1]} : vector<8x384xf32> to vector<8x64xf32>
    %15 = arith.truncf %14 : vector<8x64xf32> to vector<8x64xbf16>
    %16 = vector.extract_strided_slice %8 {offsets = [0, 0], sizes = [8, 64], strides = [1, 1]} : vector<8x384xf32> to vector<8x64xf32>
    %17 = arith.truncf %16 : vector<8x64xf32> to vector<8x64xbf16>
    %18 = tpu.transpose %15, [1, 0] : vector<8x64xbf16> -> vector<64x8xbf16>
    %cst_10 = arith.constant dense<0.000000e+00> : vector<8x8xf32>
    %19 = tpu.matmul %13, %18, %cst_10 {dimension_numbers = #tpu.dot_dimension_numbers<[1], [0], [0], [1], [0, 0, 1, 1], [], []>} : vector<8x64xbf16>, vector<64x8xbf16>, vector<8x8xf32> -> vector<8x8xf32>
    %cst_11 = arith.constant 0.0510310382 : f32
    %20 = vector.broadcast %cst_11 : f32 to vector<8x8xf32>
    %21 = arith.mulf %19, %20 : vector<8x8xf32>
    %cst_12 = arith.constant -1.000000e+30 : f32
    %22 = vector.broadcast %cst_12 : f32 to vector<8x8xf32>
    %23 = arith.select %11, %21, %22 : vector<8x8xi1>, vector<8x8xf32>
    %cst_13 = arith.constant dense<0xFF800000> : vector<8xf32>
    %24 = vector.multi_reduction <maximumf>, %23, %cst_13 [1] : vector<8x8xf32> to vector<8xf32>
    %25 = vector.shape_cast %24 : vector<8xf32> to vector<8x1xf32>
    %26 = vector.broadcast %25 : vector<8x1xf32> to vector<8x8xf32>
    %27 = arith.subf %23, %26 : vector<8x8xf32>
    %28 = math.exp %27 : vector<8x8xf32>
    %cst_14 = arith.constant dense<0.000000e+00> : vector<8xf32>
    %29 = vector.multi_reduction <add>, %28, %cst_14 [1] : vector<8x8xf32> to vector<8xf32>
    %30 = vector.shape_cast %29 : vector<8xf32> to vector<8x1xf32>
    %31 = tpu.reciprocal %30 {approx = true} : vector<8x1xf32> -> vector<8x1xf32>
    %32 = vector.broadcast %31 : vector<8x1xf32> to vector<8x8xf32>
    %33 = arith.mulf %28, %32 : vector<8x8xf32>
    %34 = arith.truncf %33 : vector<8x8xf32> to vector<8x8xbf16>
    %cst_15 = arith.constant dense<0.000000e+00> : vector<8x64xf32>
    %35 = tpu.matmul %34, %17, %cst_15 {dimension_numbers = #tpu.dot_dimension_numbers<[1], [0], [0], [1], [0, 0, 1, 1], [], []>} : vector<8x8xbf16>, vector<8x64xbf16>, vector<8x64xf32> -> vector<8x64xf32>
    %36 = vector.extract_strided_slice %4 {offsets = [0, 64], sizes = [8, 64], strides = [1, 1]} : vector<8x384xf32> to vector<8x64xf32>
    %37 = arith.truncf %36 : vector<8x64xf32> to vector<8x64xbf16>
    %38 = vector.extract_strided_slice %6 {offsets = [0, 64], sizes = [8, 64], strides = [1, 1]} : vector<8x384xf32> to vector<8x64xf32>
    %39 = arith.truncf %38 : vector<8x64xf32> to vector<8x64xbf16>
    %40 = vector.extract_strided_slice %8 {offsets = [0, 64], sizes = [8, 64], strides = [1, 1]} : vector<8x384xf32> to vector<8x64xf32>
    %41 = arith.truncf %40 : vector<8x64xf32> to vector<8x64xbf16>
    %42 = tpu.transpose %39, [1, 0] : vector<8x64xbf16> -> vector<64x8xbf16>
    %cst_16 = arith.constant dense<0.000000e+00> : vector<8x8xf32>
    %43 = tpu.matmul %37, %42, %cst_16 {dimension_numbers = #tpu.dot_dimension_numbers<[1], [0], [0], [1], [0, 0, 1, 1], [], []>} : vector<8x64xbf16>, vector<64x8xbf16>, vector<8x8xf32> -> vector<8x8xf32>
    %cst_17 = arith.constant 0.0510310382 : f32
    %44 = vector.broadcast %cst_17 : f32 to vector<8x8xf32>
    %45 = arith.mulf %43, %44 : vector<8x8xf32>
    %cst_18 = arith.constant -1.000000e+30 : f32
    %46 = vector.broadcast %cst_18 : f32 to vector<8x8xf32>
    %47 = arith.select %11, %45, %46 : vector<8x8xi1>, vector<8x8xf32>
    %cst_19 = arith.constant dense<0xFF800000> : vector<8xf32>
    %48 = vector.multi_reduction <maximumf>, %47, %cst_19 [1] : vector<8x8xf32> to vector<8xf32>
    %49 = vector.shape_cast %48 : vector<8xf32> to vector<8x1xf32>
    %50 = vector.broadcast %49 : vector<8x1xf32> to vector<8x8xf32>
    %51 = arith.subf %47, %50 : vector<8x8xf32>
    %52 = math.exp %51 : vector<8x8xf32>
    %cst_20 = arith.constant dense<0.000000e+00> : vector<8xf32>
    %53 = vector.multi_reduction <add>, %52, %cst_20 [1] : vector<8x8xf32> to vector<8xf32>
    %54 = vector.shape_cast %53 : vector<8xf32> to vector<8x1xf32>
    %55 = tpu.reciprocal %54 {approx = true} : vector<8x1xf32> -> vector<8x1xf32>
    %56 = vector.broadcast %55 : vector<8x1xf32> to vector<8x8xf32>
    %57 = arith.mulf %52, %56 : vector<8x8xf32>
    %58 = arith.truncf %57 : vector<8x8xf32> to vector<8x8xbf16>
    %cst_21 = arith.constant dense<0.000000e+00> : vector<8x64xf32>
    %59 = tpu.matmul %58, %41, %cst_21 {dimension_numbers = #tpu.dot_dimension_numbers<[1], [0], [0], [1], [0, 0, 1, 1], [], []>} : vector<8x8xbf16>, vector<8x64xbf16>, vector<8x64xf32> -> vector<8x64xf32>
    %60 = vector.extract_strided_slice %4 {offsets = [0, 128], sizes = [8, 64], strides = [1, 1]} : vector<8x384xf32> to vector<8x64xf32>
    %61 = arith.truncf %60 : vector<8x64xf32> to vector<8x64xbf16>
    %62 = vector.extract_strided_slice %6 {offsets = [0, 128], sizes = [8, 64], strides = [1, 1]} : vector<8x384xf32> to vector<8x64xf32>
    %63 = arith.truncf %62 : vector<8x64xf32> to vector<8x64xbf16>
    %64 = vector.extract_strided_slice %8 {offsets = [0, 128], sizes = [8, 64], strides = [1, 1]} : vector<8x384xf32> to vector<8x64xf32>
    %65 = arith.truncf %64 : vector<8x64xf32> to vector<8x64xbf16>
    %66 = tpu.transpose %63, [1, 0] : vector<8x64xbf16> -> vector<64x8xbf16>
    %cst_22 = arith.constant dense<0.000000e+00> : vector<8x8xf32>
    %67 = tpu.matmul %61, %66, %cst_22 {dimension_numbers = #tpu.dot_dimension_numbers<[1], [0], [0], [1], [0, 0, 1, 1], [], []>} : vector<8x64xbf16>, vector<64x8xbf16>, vector<8x8xf32> -> vector<8x8xf32>
    %cst_23 = arith.constant 0.0510310382 : f32
    %68 = vector.broadcast %cst_23 : f32 to vector<8x8xf32>
    %69 = arith.mulf %67, %68 : vector<8x8xf32>
    %cst_24 = arith.constant -1.000000e+30 : f32
    %70 = vector.broadcast %cst_24 : f32 to vector<8x8xf32>
    %71 = arith.select %11, %69, %70 : vector<8x8xi1>, vector<8x8xf32>
    %cst_25 = arith.constant dense<0xFF800000> : vector<8xf32>
    %72 = vector.multi_reduction <maximumf>, %71, %cst_25 [1] : vector<8x8xf32> to vector<8xf32>
    %73 = vector.shape_cast %72 : vector<8xf32> to vector<8x1xf32>
    %74 = vector.broadcast %73 : vector<8x1xf32> to vector<8x8xf32>
    %75 = arith.subf %71, %74 : vector<8x8xf32>
    %76 = math.exp %75 : vector<8x8xf32>
    %cst_26 = arith.constant dense<0.000000e+00> : vector<8xf32>
    %77 = vector.multi_reduction <add>, %76, %cst_26 [1] : vector<8x8xf32> to vector<8xf32>
    %78 = vector.shape_cast %77 : vector<8xf32> to vector<8x1xf32>
    %79 = tpu.reciprocal %78 {approx = true} : vector<8x1xf32> -> vector<8x1xf32>
    %80 = vector.broadcast %79 : vector<8x1xf32> to vector<8x8xf32>
    %81 = arith.mulf %76, %80 : vector<8x8xf32>
    %82 = arith.truncf %81 : vector<8x8xf32> to vector<8x8xbf16>
    %cst_27 = arith.constant dense<0.000000e+00> : vector<8x64xf32>
    %83 = tpu.matmul %82, %65, %cst_27 {dimension_numbers = #tpu.dot_dimension_numbers<[1], [0], [0], [1], [0, 0, 1, 1], [], []>} : vector<8x8xbf16>, vector<8x64xbf16>, vector<8x64xf32> -> vector<8x64xf32>
    %84 = vector.extract_strided_slice %4 {offsets = [0, 192], sizes = [8, 64], strides = [1, 1]} : vector<8x384xf32> to vector<8x64xf32>
    %85 = arith.truncf %84 : vector<8x64xf32> to vector<8x64xbf16>
    %86 = vector.extract_strided_slice %6 {offsets = [0, 192], sizes = [8, 64], strides = [1, 1]} : vector<8x384xf32> to vector<8x64xf32>
    %87 = arith.truncf %86 : vector<8x64xf32> to vector<8x64xbf16>
    %88 = vector.extract_strided_slice %8 {offsets = [0, 192], sizes = [8, 64], strides = [1, 1]} : vector<8x384xf32> to vector<8x64xf32>
    %89 = arith.truncf %88 : vector<8x64xf32> to vector<8x64xbf16>
    %90 = tpu.transpose %87, [1, 0] : vector<8x64xbf16> -> vector<64x8xbf16>
    %cst_28 = arith.constant dense<0.000000e+00> : vector<8x8xf32>
    %91 = tpu.matmul %85, %90, %cst_28 {dimension_numbers = #tpu.dot_dimension_numbers<[1], [0], [0], [1], [0, 0, 1, 1], [], []>} : vector<8x64xbf16>, vector<64x8xbf16>, vector<8x8xf32> -> vector<8x8xf32>
    %cst_29 = arith.constant 0.0510310382 : f32
    %92 = vector.broadcast %cst_29 : f32 to vector<8x8xf32>
    %93 = arith.mulf %91, %92 : vector<8x8xf32>
    %cst_30 = arith.constant -1.000000e+30 : f32
    %94 = vector.broadcast %cst_30 : f32 to vector<8x8xf32>
    %95 = arith.select %11, %93, %94 : vector<8x8xi1>, vector<8x8xf32>
    %cst_31 = arith.constant dense<0xFF800000> : vector<8xf32>
    %96 = vector.multi_reduction <maximumf>, %95, %cst_31 [1] : vector<8x8xf32> to vector<8xf32>
    %97 = vector.shape_cast %96 : vector<8xf32> to vector<8x1xf32>
    %98 = vector.broadcast %97 : vector<8x1xf32> to vector<8x8xf32>
    %99 = arith.subf %95, %98 : vector<8x8xf32>
    %100 = math.exp %99 : vector<8x8xf32>
    %cst_32 = arith.constant dense<0.000000e+00> : vector<8xf32>
    %101 = vector.multi_reduction <add>, %100, %cst_32 [1] : vector<8x8xf32> to vector<8xf32>
    %102 = vector.shape_cast %101 : vector<8xf32> to vector<8x1xf32>
    %103 = tpu.reciprocal %102 {approx = true} : vector<8x1xf32> -> vector<8x1xf32>
    %104 = vector.broadcast %103 : vector<8x1xf32> to vector<8x8xf32>
    %105 = arith.mulf %100, %104 : vector<8x8xf32>
    %106 = arith.truncf %105 : vector<8x8xf32> to vector<8x8xbf16>
    %cst_33 = arith.constant dense<0.000000e+00> : vector<8x64xf32>
    %107 = tpu.matmul %106, %89, %cst_33 {dimension_numbers = #tpu.dot_dimension_numbers<[1], [0], [0], [1], [0, 0, 1, 1], [], []>} : vector<8x8xbf16>, vector<8x64xbf16>, vector<8x64xf32> -> vector<8x64xf32>
    %108 = vector.extract_strided_slice %4 {offsets = [0, 256], sizes = [8, 64], strides = [1, 1]} : vector<8x384xf32> to vector<8x64xf32>
    %109 = arith.truncf %108 : vector<8x64xf32> to vector<8x64xbf16>
    %110 = vector.extract_strided_slice %6 {offsets = [0, 256], sizes = [8, 64], strides = [1, 1]} : vector<8x384xf32> to vector<8x64xf32>
    %111 = arith.truncf %110 : vector<8x64xf32> to vector<8x64xbf16>
    %112 = vector.extract_strided_slice %8 {offsets = [0, 256], sizes = [8, 64], strides = [1, 1]} : vector<8x384xf32> to vector<8x64xf32>
    %113 = arith.truncf %112 : vector<8x64xf32> to vector<8x64xbf16>
    %114 = tpu.transpose %111, [1, 0] : vector<8x64xbf16> -> vector<64x8xbf16>
    %cst_34 = arith.constant dense<0.000000e+00> : vector<8x8xf32>
    %115 = tpu.matmul %109, %114, %cst_34 {dimension_numbers = #tpu.dot_dimension_numbers<[1], [0], [0], [1], [0, 0, 1, 1], [], []>} : vector<8x64xbf16>, vector<64x8xbf16>, vector<8x8xf32> -> vector<8x8xf32>
    %cst_35 = arith.constant 0.0510310382 : f32
    %116 = vector.broadcast %cst_35 : f32 to vector<8x8xf32>
    %117 = arith.mulf %115, %116 : vector<8x8xf32>
    %cst_36 = arith.constant -1.000000e+30 : f32
    %118 = vector.broadcast %cst_36 : f32 to vector<8x8xf32>
    %119 = arith.select %11, %117, %118 : vector<8x8xi1>, vector<8x8xf32>
    %cst_37 = arith.constant dense<0xFF800000> : vector<8xf32>
    %120 = vector.multi_reduction <maximumf>, %119, %cst_37 [1] : vector<8x8xf32> to vector<8xf32>
    %121 = vector.shape_cast %120 : vector<8xf32> to vector<8x1xf32>
    %122 = vector.broadcast %121 : vector<8x1xf32> to vector<8x8xf32>
    %123 = arith.subf %119, %122 : vector<8x8xf32>
    %124 = math.exp %123 : vector<8x8xf32>
    %cst_38 = arith.constant dense<0.000000e+00> : vector<8xf32>
    %125 = vector.multi_reduction <add>, %124, %cst_38 [1] : vector<8x8xf32> to vector<8xf32>
    %126 = vector.shape_cast %125 : vector<8xf32> to vector<8x1xf32>
    %127 = tpu.reciprocal %126 {approx = true} : vector<8x1xf32> -> vector<8x1xf32>
    %128 = vector.broadcast %127 : vector<8x1xf32> to vector<8x8xf32>
    %129 = arith.mulf %124, %128 : vector<8x8xf32>
    %130 = arith.truncf %129 : vector<8x8xf32> to vector<8x8xbf16>
    %cst_39 = arith.constant dense<0.000000e+00> : vector<8x64xf32>
    %131 = tpu.matmul %130, %113, %cst_39 {dimension_numbers = #tpu.dot_dimension_numbers<[1], [0], [0], [1], [0, 0, 1, 1], [], []>} : vector<8x8xbf16>, vector<8x64xbf16>, vector<8x64xf32> -> vector<8x64xf32>
    %132 = vector.extract_strided_slice %4 {offsets = [0, 320], sizes = [8, 64], strides = [1, 1]} : vector<8x384xf32> to vector<8x64xf32>
    %133 = arith.truncf %132 : vector<8x64xf32> to vector<8x64xbf16>
    %134 = vector.extract_strided_slice %6 {offsets = [0, 320], sizes = [8, 64], strides = [1, 1]} : vector<8x384xf32> to vector<8x64xf32>
    %135 = arith.truncf %134 : vector<8x64xf32> to vector<8x64xbf16>
    %136 = vector.extract_strided_slice %8 {offsets = [0, 320], sizes = [8, 64], strides = [1, 1]} : vector<8x384xf32> to vector<8x64xf32>
    %137 = arith.truncf %136 : vector<8x64xf32> to vector<8x64xbf16>
    %138 = tpu.transpose %135, [1, 0] : vector<8x64xbf16> -> vector<64x8xbf16>
    %cst_40 = arith.constant dense<0.000000e+00> : vector<8x8xf32>
    %139 = tpu.matmul %133, %138, %cst_40 {dimension_numbers = #tpu.dot_dimension_numbers<[1], [0], [0], [1], [0, 0, 1, 1], [], []>} : vector<8x64xbf16>, vector<64x8xbf16>, vector<8x8xf32> -> vector<8x8xf32>
    %cst_41 = arith.constant 0.0510310382 : f32
    %140 = vector.broadcast %cst_41 : f32 to vector<8x8xf32>
    %141 = arith.mulf %139, %140 : vector<8x8xf32>
    %cst_42 = arith.constant -1.000000e+30 : f32
    %142 = vector.broadcast %cst_42 : f32 to vector<8x8xf32>
    %143 = arith.select %11, %141, %142 : vector<8x8xi1>, vector<8x8xf32>
    %cst_43 = arith.constant dense<0xFF800000> : vector<8xf32>
    %144 = vector.multi_reduction <maximumf>, %143, %cst_43 [1] : vector<8x8xf32> to vector<8xf32>
    %145 = vector.shape_cast %144 : vector<8xf32> to vector<8x1xf32>
    %146 = vector.broadcast %145 : vector<8x1xf32> to vector<8x8xf32>
    %147 = arith.subf %143, %146 : vector<8x8xf32>
    %148 = math.exp %147 : vector<8x8xf32>
    %cst_44 = arith.constant dense<0.000000e+00> : vector<8xf32>
    %149 = vector.multi_reduction <add>, %148, %cst_44 [1] : vector<8x8xf32> to vector<8xf32>
    %150 = vector.shape_cast %149 : vector<8xf32> to vector<8x1xf32>
    %151 = tpu.reciprocal %150 {approx = true} : vector<8x1xf32> -> vector<8x1xf32>
    %152 = vector.broadcast %151 : vector<8x1xf32> to vector<8x8xf32>
    %153 = arith.mulf %148, %152 : vector<8x8xf32>
    %154 = arith.truncf %153 : vector<8x8xf32> to vector<8x8xbf16>
    %cst_45 = arith.constant dense<0.000000e+00> : vector<8x64xf32>
    %155 = tpu.matmul %154, %137, %cst_45 {dimension_numbers = #tpu.dot_dimension_numbers<[1], [0], [0], [1], [0, 0, 1, 1], [], []>} : vector<8x8xbf16>, vector<8x64xbf16>, vector<8x64xf32> -> vector<8x64xf32>
    %156 = tpu.concatenate %35, %59, %83, %107, %131, %155 in 1 : vector<8x64xf32>, vector<8x64xf32>, vector<8x64xf32>, vector<8x64xf32>, vector<8x64xf32>, vector<8x64xf32> -> vector<8x384xf32>
    %157 = arith.truncf %156 : vector<8x384xf32> to vector<8x384xbf16>
    %c0_46 = arith.constant 0 : index
    %c0_47 = arith.constant 0 : index
    %158 = vector.load %arg5[%c0_46, %c0_47] : memref<384x384xbf16, #tpu.memory_space<vmem>>, vector<384x384xbf16>
    %cst_48 = arith.constant dense<0.000000e+00> : vector<8x384xf32>
    %159 = tpu.matmul %157, %158, %cst_48 {dimension_numbers = #tpu.dot_dimension_numbers<[1], [0], [0], [1], [0, 0, 1, 1], [], []>} : vector<8x384xbf16>, vector<384x384xbf16>, vector<8x384xf32> -> vector<8x384xf32>
    %c0_49 = arith.constant 0 : index
    %c0_50 = arith.constant 0 : index
    %160 = vector.load %arg6[%c0_49, %c0_50] : memref<1x384xf32, #tpu.memory_space<vmem>>, vector<1x384xf32>
    %161 = vector.broadcast %160 : vector<1x384xf32> to vector<8x384xf32>
    %162 = arith.addf %159, %161 : vector<8x384xf32>
    %c0_51 = arith.constant 0 : index
    %c0_52 = arith.constant 0 : index
    %c0_53 = arith.constant 0 : index
    %163 = vector.load %arg7[%c0_51, %c0_52, %c0_53] : memref<1x8x384xf32, #tpu.memory_space<vmem>>, vector<1x8x384xf32>
    %164 = vector.shape_cast %163 : vector<1x8x384xf32> to vector<8x384xf32>
    %165 = vector.shape_cast %162 : vector<8x384xf32> to vector<1x8x384xf32>
    tpu.vector_store %arg7[%c0_51, %c0_52, %c0_53], %165 {strides = array<i32>} : memref<1x8x384xf32, #tpu.memory_space<vmem>>, vector<1x8x384xf32>,
    return
  }
  func.func @transform_0(%arg0: i32) -> (i32, i32, i32) {
    %c0_i32 = arith.constant 0 : i32
    %c0_i32_0 = arith.constant 0 : i32
    %c0_i32_1 = arith.constant 0 : i32
    return %arg0, %c0_i32, %c0_i32_0 : i32, i32, i32
  }
  func.func @transform_1(%arg0: i32) -> (i32, i32) {
    %c0_i32 = arith.constant 0 : i32
    %c0_i32_0 = arith.constant 0 : i32
    %c0_i32_1 = arith.constant 0 : i32
    return %c0_i32, %c0_i32_0 : i32, i32
  }
  func.func @transform_2(%arg0: i32) -> (i32, i32) {
    %c0_i32 = arith.constant 0 : i32
    %c0_i32_0 = arith.constant 0 : i32
    %c0_i32_1 = arith.constant 0 : i32
    return %c0_i32, %c0_i32_0 : i32, i32
  }
  func.func @transform_3(%arg0: i32) -> (i32, i32) {
    %c0_i32 = arith.constant 0 : i32
    %c0_i32_0 = arith.constant 0 : i32
    %c0_i32_1 = arith.constant 0 : i32
    return %c0_i32, %c0_i32_0 : i32, i32
  }
  func.func @transform_4(%arg0: i32) -> (i32, i32) {
    %c0_i32 = arith.constant 0 : i32
    %c0_i32_0 = arith.constant 0 : i32
    %c0_i32_1 = arith.constant 0 : i32
    return %c0_i32, %c0_i32_0 : i32, i32
  }
  func.func @transform_5(%arg0: i32) -> (i32, i32) {
    %c0_i32 = arith.constant 0 : i32
    %c0_i32_0 = arith.constant 0 : i32
    %c0_i32_1 = arith.constant 0 : i32
    return %c0_i32, %c0_i32_0 : i32, i32
  }
  func.func @transform_6(%arg0: i32) -> (i32, i32, i32) {
    %c0_i32 = arith.constant 0 : i32
    %c0_i32_0 = arith.constant 0 : i32
    %c0_i32_1 = arith.constant 0 : i32
    return %arg0, %c0_i32, %c0_i32_0 : i32, i32, i32
  }
}

</mosaic_0001>

<bundles_post_ra>
// kernel: tpu_custom_call.1
= control target key start
LH: loop header
LB: loop body
LE: loop exit
PB: predicated region body
PF: predicated region fallthrough
CT: control target
= control target key end

     0   :  { %s5578_s0 = inlined_call_operand.hbm [shape: f32[2,8,384], index: 0, kind: input, shape index: {}]   ;;  %s5579_s1 = inlined_call_operand.hbm [shape: bf16[384,384], index: 1, kind: input, shape index: {}]   ;;  %s5580_s2 = inlined_call_operand.hbm [shape: bf16[384,384], index: 2, kind: input, shape index: {}]   ;;  %s5581_s3 = inlined_call_operand.hbm [shape: bf16[384,384], index: 3, kind: input, shape index: {}]   ;;  %s5582_s4 = inlined_call_operand.hbm [shape: bf16[384,384], index: 4, kind: input, shape index: {}]   ;;  %s5583_s5 = inlined_call_operand.vmem [shape: f32[1,384], index: 5, kind: input, shape index: {}]   ;;  %s5584_s6 = inlined_call_operand.hbm [shape: f32[2,8,384], index: 6, kind: output, shape index: {}]  }
   0x1   :  { %5589 = sst [smem:[#allocation16_spill]] %s5579_s1 }
   0x2   :  { %11 = vsyncpa [#allocation3], 0 }
   0x3   :  { %13 = vsyncpa [#allocation3 + $0x1], 0 }
   0x4   :  { %14 = vsyncpa [#allocation6], 0 }
   0x5   :  { %15 = vsyncpa [#allocation9], 0 }
   0x6   :  { %16 = vsyncpa [#allocation4], 0 }
   0x7   :  { %18 = vsyncpa [#allocation4 + $0x1], 0  ;;  %s5121_s21 = smov 0   ;;  %s5123_s22 = smov 0  }
   0x8   :  { %s5125_s23 = smov 0   ;;  %s5127_s24 = smov 0  }
   0x9 LB: > { %s5074_s25 = smov [#allocation5]   ;;  %s5142_s27 = sadd.s32 4294967295, %s5072_s24   ;;  %s5072_s24 = sphi %s5127_s24, %s5611_s24   ;;  %s5068_s23 = sphi %s5125_s23, %s5610_s23   ;;  %s5064_s22 = sphi %s5123_s22, %s5609_s22   ;;  %s5060_s21 = sphi %s5121_s21, %s5608_s21  }
   0xa   : > { %s198_s26 = sshll.u32 %s5074_s25, 4  ;;  %p3743_p0 = scmp.ge.s32.totalorder %s5072_s24, 1  ;;  %s199_s26 = int_to_ptr.vmem [resolvable:$true] %s198_s26 }
   0xb   : > { %p5585_p1 = scmp.eq.s32.totalorder %s5142_s27, 0  ;;  %p186_p2 = scmp.lt.s32.totalorder %s5072_s24, 3 }
   0xc   : > { %s5075_s29 = smov [#allocation8]   ;;  %s5076_s8 = smov [#allocation7]  }
   0xd   : > { %p5147_p3 = pnand %p3743_p0, %p186_p2  ;;  %s224_s30 = sshll.u32 %s5075_s29, 4  ;;  %s5160_s30 = int_to_ptr.vmem [resolvable:$true] %s224_s30 }
   0xe   : > { %s211_s9 = sshll.u32 %s5076_s8, 4  ;;  %s4879_s10 = scalar_lea.vmem %s199_s26, 9216  ;;  %s5162_s9 = int_to_ptr.vmem [resolvable:$true] %s211_s9 }
   0xf   : > { %s5590_s28 = scalar_select %p5147_p3, 1, 0 }
  0x10   : > { %p4382_p5 = pneg %p5147_p3  ;;  %p4880_p8 = scmp.ne.s32.totalorder %s199_s26, %s4879_s10 }
  0x11   : > { %p4887_p11 = scmp.lt.s32.totalorder %s199_s26, %s199_s26  ;;  %p4888_p12 = scmp.lt.s32.totalorder %s4879_s10, %s4879_s10 }
  0x12   : > { %p5156_p6 = pnand %p4382_p5, %p5585_p1 }
  0x13   : > { %p4889_p13 = por %p4888_p12, %p4887_p11 }
  0x14   : > { %p4870_p7 = pneg %p5156_p6 }
  0x16   : > { %p4882_p9 = pnand %p4880_p8, %p4870_p7 }
  0x18   : > { %p4883_p10 = pneg %p4882_p9 }
  0x1a   : > { %p4890_p0 = pnand %p4889_p13, %p4883_p10 }
  0x1c   : > { %4893 = shalt.err (!%p4890_p0)
}
  0x1d   : > { %s5077_s11 = smov 192   ;;  %s5078_s12 = smov 12  }
  0x1e   : > { %s5592_s1 = sld [smem:[#allocation16_spill]]  ;;  %s4905_s15 = scalar_lea.vmem %s5160_s30, 9216 }
  0x1f   : > { %p4906_p2 = scmp.ne.s32.totalorder %s5160_s30, %s4905_s15  ;;  %p4913_p9 = scmp.lt.s32.totalorder %s5160_s30, %s5160_s30 }
  0x20   : > { %p4914_p10 = scmp.lt.s32.totalorder %s4905_s15, %s4905_s15 }
  0x21   : > { %p4908_p5 = pnand %p4906_p2, %p4870_p7 }
  0x22   : > { %p4915_p11 = por %p4914_p10, %p4913_p9 }
  0x23   : > { %p4909_p8 = pneg %p4908_p5 }
  0x24   : > { %4385 = dma.hbm_to_vmem [thread:$0]  (!%p5156_p6), %s5592_s1, 9216, %s199_s26, [#allocation6], %s5077_s11, %s5077_s11, %s5078_s12  }
  0x25   : > { %p4916_p12 = pnand %p4915_p11, %p4909_p8 }
  0x27   : > { %4919 = shalt.err (!%p4916_p12)
}
  0x28   : > { %4391 = dma.hbm_to_vmem [thread:$0]  (!%p5156_p6), %s5581_s3, 9216, %s5160_s30, [#allocation9], %s5077_s11, %s5077_s11, %s5078_s12  }
  0x29   : > { %s4931_s18 = scalar_lea.vmem %s5162_s9, 9216  ;;  %p4939_p5 = scmp.lt.s32.totalorder %s5162_s9, %s5162_s9 }
  0x2a   : > { %p4932_p13 = scmp.ne.s32.totalorder %s5162_s9, %s4931_s18  ;;  %p4940_p8 = scmp.lt.s32.totalorder %s4931_s18, %s4931_s18 }
  0x2c   : > { %p4934_p0 = pnand %p4932_p13, %p4870_p7  ;;  %p4941_p9 = por %p4940_p8, %p4939_p5 }
  0x2e   : > { %p4935_p2 = pneg %p4934_p0 }
  0x30   : > { %p4942_p10 = pnand %p4941_p9, %p4935_p2 }
  0x32   : > { %4945 = shalt.err (!%p4942_p10)
}
  0x33   : > { %4388 = dma.hbm_to_vmem [thread:$0]  (!%p5156_p6), %s5580_s2, 9216, %s5162_s9, [#allocation6], %s5077_s11, %s5077_s11, %s5078_s12  }
  0x34   : > { %s5079_s25 = smov [#allocation10]  }
  0x35   : > { %s237_s26 = sshll.u32 %s5079_s25, 4  ;;  %s238_s26 = int_to_ptr.vmem [resolvable:$true] %s237_s26 }
  0x36   : > { %s4957_s29 = scalar_lea.vmem %s238_s26, 9216  ;;  %p4965_p0 = scmp.lt.s32.totalorder %s238_s26, %s238_s26 }
  0x37   : > { %p4958_p11 = scmp.ne.s32.totalorder %s238_s26, %s4957_s29  ;;  %p4966_p2 = scmp.lt.s32.totalorder %s4957_s29, %s4957_s29 }
  0x39   : > { %p4960_p12 = pnand %p4958_p11, %p4870_p7  ;;  %p4967_p5 = por %p4966_p2, %p4965_p0 }
  0x3b   : > { %p4961_p13 = pneg %p4960_p12 }
  0x3d   : > { %p4968_p8 = pnand %p4967_p5, %p4961_p13 }
  0x3f   : > { %4971 = shalt.err (!%p4968_p8)
}
  0x40   : > { %4394 = dma.hbm_to_vmem [thread:$0]  (!%p5156_p6), %s5582_s4, 9216, %s238_s26, [#allocation9], %s5077_s11, %s5077_s11, %s5078_s12  }
  0x41   : > { %s3742_s7 = sadd.s32 4294967294, %s5072_s24   ;;  %s5222_s9 = sadd.s32 1, %s5072_s24  }
  0x42   : > { %s28_s10 = ssub.s32 %s5072_s24, %s5222_s9  ;;  %s31_s13 = sadd.s32 1, %s5068_s23 }
  0x43   : > { %p29_p7 = scmp.eq.s32.totalorder %s28_s10, 0  ;;  %p38_p9 = scmp.ne.s32.totalorder %s5068_s23, %s5064_s22 }
  0x44   : > { %p39_p10 = scmp.eq.s32.totalorder %s5072_s24, 0  ;;  %p44_p11 = scmp.ne.s32.totalorder %s5064_s22, %s5060_s21 }
  0x45   : > { %s5233_s14 = scalar_select %p29_p7, %s5068_s23, %s31_s13  }
  0x46   : > { %p40_p12 = por %p39_p10, %p38_p9  ;;  %p5237_p13 = por %p5585_p1, %p44_p11 }
  0x47   : > { %p173_p6 = scmp.eq.s32.totalorder %s5142_s27, 1  ;;  %p179_p0 = scmp.eq.s32.totalorder %s3742_s7, 1 }
  0x48   : > { %s5593_s15 = scalar_select %p5237_p13, 1, 0 }
  0x49   : > { %p4407_p2 = scmp.lt.s32.totalorder %s5072_s24, 2  ;;  %s254_s11 = sand.u32 1, %s5068_s23  }
  0x4a   : > { %p5244_p5 = por %p173_p6, %p38_p9  ;;  %p5248_p8 = por %p179_p0, %p44_p11 }
  0x4b   : > { %s4358_s17 = smul.u32 24, %s254_s11  ;;  %p5253_p7 = pnand %p4407_p2, %p40_p12 }
  0x4c   : > { %s5594_s12 = scalar_select %p5244_p5, 1, 0 }
  0x4d   : > { %s5595_s16 = scalar_select %p5248_p8, 1, 0 }
  0x4e   : > { %s4359_s18 = smul.u32 384, %s5072_s24  ;;  %s258_s29 = scalar_lea.vmem [#allocation2], %s4358_s17 }
  0x4f   : > { %s266_s30 = sshll.u32 %s258_s29, 4  ;;  %s255_s8 = scalar_lea.sflag [#allocation3], %s254_s11  ;;  %s267_s30 = int_to_ptr.vmem [resolvable:$true] %s266_s30 }
  0x50   : > { %s5260_s26 = scalar_lea.hbm %s5578_s0, %s4359_s18  ;;  %p4974_p10 = pneg %p5253_p7 }
  0x51   : > { %s4972_s7 = scalar_lea.hbm %s5260_s26, 384  ;;  %s4977_s20 = scalar_lea.hbm %s5578_s0, 768 }
  0x52   : > { %p4973_p9 = scmp.ne.s32.totalorder %s5260_s26, %s4972_s7  ;;  %p4978_p6 = scmp.lt.s32.totalorder %s5260_s26, %s5578_s0 }
  0x53   : > { %p4979_p0 = scmp.lt.s32.totalorder %s4977_s20, %s4972_s7 }
  0x54   : > { %p4975_p11 = pnand %p4974_p10, %p4973_p9 }
  0x55   : > { %p4980_p2 = por %p4979_p0, %p4978_p6 }
  0x56   : > { %p4976_p12 = pneg %p4975_p11 }
  0x58   : > { %p4981_p4 = pnand %p4980_p2, %p4976_p12 }
  0x5a   : > { %4984 = shalt.err (!%p4981_p4)
}
  0x5b   : > { %s4985_s17 = scalar_lea.vmem %s267_s30, 384  ;;  %s5080_s11 = smov [#allocation2]  }
  0x5c   : > { %p4986_p1 = scmp.ne.s32.totalorder %s267_s30, %s4985_s17  ;;  %s4990_s29 = sshll.u32 %s5080_s11, 4  ;;  %s4991_s29 = int_to_ptr.vmem [resolvable:$false] %s4990_s29 }
  0x5d   : > { %s4992_s1 = scalar_lea.vmem %s4991_s29, 768  ;;  %p4993_p9 = scmp.lt.s32.totalorder %s267_s30, %s4991_s29 }
  0x5e   : > { %p4988_p8 = pnand %p4986_p1, %p4974_p10  ;;  %p4994_p11 = scmp.lt.s32.totalorder %s4992_s1, %s4985_s17 }
  0x60   : > { %p4989_p5 = pneg %p4988_p8  ;;  %p4995_p13 = por %p4994_p11, %p4993_p9 }
  0x62   : > { %p4996_p3 = pnand %p4995_p13, %p4989_p5 }
  0x64   : > { %4999 = shalt.err (!%p4996_p3)
}
  0x65   : > { %4398 = dma.hbm_to_vmem [thread:$0]  (!%p5253_p7), %s5260_s26, 384, %s267_s30, %s255_s8  }
  0x66   : > { %p5597_p12 = scmp.ne.s32.totalorder %s5590_s28, 0 }
  0x67   : > { %s5279_s7 = sand.u32 (!%p5597_p12), 1, %s5064_s22   ;;  %p5598_p1 = scmp.ne.s32.totalorder (!%p5597_p12), %s5593_s15, 0 }
  0x68   : > { %275 = sbr.rel (%p5597_p12) target bundleno = 3090 (0xc12), region = 44  ;;  %s278_s13 = scalar_lea.sflag (!%p5597_p12), [#allocation3], %s5279_s7 }
  0x69   : > { %s4360_s10 = smul.u32 (!%p5597_p12), 24, %s5279_s7 }
  0x6b   : > { %s5285_s1 = scalar_lea.vmem (!%p5597_p12), [#allocation2], %s4360_s10 }
  0x6d   : > { %5043 = dma.done.wait (%p5598_p1), %s278_s13, 384  }
  0x6e   : > { %5045 = vsyncadd (%p5598_p1), %s278_s13, 4294966912  ;;  %p5599_p3 = scmp.eq.s32.totalorder %s5142_s27, 0 }
  0x70   : > { %5047 = dma.done.wait (%p5599_p3), [#allocation6], 18432   ;;  %p5600_p4 = pmov %p5599_p3 }
  0x71   : > { %p5601_p13 = pmov %p5599_p3 }
  0x72   : > { %5049 = vsyncadd (%p5600_p4), [#allocation6], 4294948864 }
  0x73   : > { %5051 = dma.done.wait (%p5601_p13), [#allocation9], 18432   ;;  %p5602_p5 = pmov %p5599_p3 }
  0x74   : > { %v5081_v0 = vmov 0   ;;  %v4460_v1 = vld [vmem:[#allocation5 + $0xac] ss:$12 sps:$4 sm:$0xff]   ;;  %v4464_v3 = vld [vmem:[#allocation5 + $0xa8] ss:$12 sps:$4 sm:$0xff]   ;;  %vm5083_vm0 = vmmov 0  }
  0x75   : > { %5053 = vsyncadd (%p5602_p5), [#allocation9], 4294948864  ;;  %886 = vmatprep.mubr.bf16.mxu1 %v5081_v0  ;;  %v4462_v2 = vld [vmem:[#allocation5 + $0x22c] ss:$12 sps:$4 sm:$0xff]   ;;  %813 = vmatprep.subr.bf16.mxu0 %v4460_v1  ;;  %v4465_v4 = vld [vmem:[#allocation5 + $0x228] ss:$12 sps:$4 sm:$0xff]  }
  0x76   : > { %854 = vmatprep.subr.bf16.mxu1 %v4462_v2  ;;  %v4466_v5 = vld [vmem:[#allocation5 + $0x94] ss:$12 sps:$4 sm:$0xff]   ;;  %814 = vmatpush1.bf16.msra.mxu0 %v4464_v3  ;;  %v4470_v7 = vld [vmem:[#allocation5 + $0x90] ss:$12 sps:$4 sm:$0xff]   ;;  %v4476_v11 = vld [vmem:[#allocation5 + $0x78] ss:$12 sps:$4 sm:$0xff]  }
  0x77   : > { %855 = vmatpush1.bf16.msra.mxu1 %v4465_v4  ;;  %v4468_v6 = vld [vmem:[#allocation5 + $0x214] ss:$12 sps:$4 sm:$0xff]   ;;  %815 = vmatprep.subr.bf16.mxu0 %v4466_v5  ;;  %v4471_v8 = vld [vmem:[#allocation5 + $0x210] ss:$12 sps:$4 sm:$0xff]   ;;  %v4477_v12 = vld [vmem:[#allocation5 + $0x1f8] ss:$12 sps:$4 sm:$0xff]  }
  0x78   : > { %856 = vmatprep.subr.bf16.mxu1 %v4468_v6  ;;  %v4472_v9 = vld [vmem:[#allocation5 + $0x7c] ss:$12 sps:$4 sm:$0xff]   ;;  %v4478_v13 = vld [vmem:[#allocation5 + $0x64] ss:$12 sps:$4 sm:$0xff]   ;;  %v4482_v15 = vld [vmem:[#allocation5 + $0x60] ss:$12 sps:$4 sm:$0xff]  }
  0x79   : > { %v4474_v10 = vld [vmem:[#allocation5 + $0x1fc] ss:$12 sps:$4 sm:$0xff]   ;;  %v4480_v14 = vld [vmem:[#allocation5 + $0x1e4] ss:$12 sps:$4 sm:$0xff]   ;;  %v4483_v16 = vld [vmem:[#allocation5 + $0x1e0] ss:$12 sps:$4 sm:$0xff]  }
  0x7a   : > { %816 = vmatpush1.bf16.msra.mxu0 %v4470_v7  ;;  %v4484_v17 = vld [vmem:[#allocation5 + $0x4c] ss:$12 sps:$4 sm:$0xff]   ;;  %v4488_v19 = vld [vmem:[#allocation5 + $0x48] ss:$12 sps:$4 sm:$0xff]   ;;  %v4494_v23 = vld [vmem:[#allocation5 + $0x30] ss:$12 sps:$4 sm:$0xff]  }
  0x7b   : > { %857 = vmatpush1.bf16.msra.mxu1 %v4471_v8  ;;  %817 = vmatprep.subr.bf16.mxu0 %v4472_v9  ;;  %v4486_v18 = vld [vmem:[#allocation5 + $0x1cc] ss:$12 sps:$4 sm:$0xff]   ;;  %v4489_v20 = vld [vmem:[#allocation5 + $0x1c8] ss:$12 sps:$4 sm:$0xff]   ;;  %v4495_v24 = vld [vmem:[#allocation5 + $0x1b0] ss:$12 sps:$4 sm:$0xff]  }
  0x7c   : > { %858 = vmatprep.subr.bf16.mxu1 %v4474_v10  ;;  %v4490_v21 = vld [vmem:[#allocation5 + $0x34] ss:$12 sps:$4 sm:$0xff]   ;;  %v4496_v25 = vld [vmem:[#allocation5 + $0x1c] ss:$12 sps:$4 sm:$0xff]   ;;  %v4500_v27 = vld [vmem:[#allocation5 + $0x18] ss:$12 sps:$4 sm:$0xff]  }
  0x7d   : > { %v4492_v22 = vld [vmem:[#allocation5 + $0x1b4] ss:$12 sps:$4 sm:$0xff]   ;;  %v4498_v26 = vld [vmem:[#allocation5 + $0x19c] ss:$12 sps:$4 sm:$0xff]   ;;  %v4501_v28 = vld [vmem:[#allocation5 + $0x198] ss:$12 sps:$4 sm:$0xff]  }
  0x7e   : > { %818 = vmatpush1.bf16.msra.mxu0 %v4476_v11  ;;  %v4502_v29 = vld [vmem:[#allocation5 + $0x4] ss:$12 sps:$4 sm:$0xff]   ;;  %v4506_v31 = vld [vmem:[#allocation5] ss:$12 sps:$4 sm:$0xff]   ;;  %v4511_v37 = vld [vmem:[#allocation5 + $0x168] ss:$12 sps:$4 sm:$0xff]  }
  0x7f   : > { %859 = vmatpush1.bf16.msra.mxu1 %v4477_v12  ;;  %819 = vmatprep.subr.bf16.mxu0 %v4478_v13  ;;  %v4504_v30 = vld [vmem:[#allocation5 + $0x184] ss:$12 sps:$4 sm:$0xff]   ;;  %v4507_v32 = vld [vmem:[#allocation5 + $0x180] ss:$12 sps:$4 sm:$0xff]   ;;  %v4518_v43 = vld [vmem:[#allocation5 + $0x13c] ss:$12 sps:$4 sm:$0xff]  }
  0x80   : > { %860 = vmatprep.subr.bf16.mxu1 %v4480_v14  ;;  %v4508_v33 = vld [vmem:[#allocation5 + $0x16c] ss:$12 sps:$4 sm:$0xff]   ;;  %v4510_v35 = vld [vmem:[#allocation5 + $0x170] ss:$12 sps:$4 sm:$0xff]   ;;  %v4513_v39 = vld [vmem:[#allocation5 + $0x154] ss:$12 sps:$4 sm:$0xff]  }
  0x81   : > { %v329_v34 = vld [vmem:[%s5285_s1 + $0x10] sm:$0xff]  ;;  %v4525_v48 = vld [vmem:[#allocation5 + $0x128] ss:$12 sps:$4 sm:$0xff]   ;;  %v5082_v11 = vmov 0.0   ;;  %vm2267_vm1 = vcmask 523264   ;;  %s5084_s28 = smov 64  }
  0x82   : > { %820 = vmatpush1.bf16.msra.mxu0 %v4482_v15  ;;  %v5301_v36 = vpack.c.bf16 %v329_v34, %v329_v34  ;;  %v4512_v38 = vld [vmem:[#allocation5 + $0xb0] ss:$12 sps:$4 sm:$0xff]   ;;  %v4515_v40 = vld [vmem:[#allocation5 + $0x158] ss:$12 sps:$4 sm:$0xff]   ;;  %v4520_v44 = vld [vmem:[#allocation5 + $0x140] ss:$12 sps:$4 sm:$0xff]  }
  0x83   : > { %861 = vmatpush1.bf16.msra.mxu1 %v4483_v16  ;;  %821 = vmatprep.subr.bf16.mxu0 %v4484_v17  ;;  %v4516_v41 = vld [vmem:[#allocation5 + $0x150] ss:$12 sps:$4 sm:$0xff]   ;;  %v4517_v42 = vld [vmem:[#allocation5 + $0x98] ss:$12 sps:$4 sm:$0xff]   ;;  %v4522_v46 = vld [vmem:[#allocation5 + $0x80] ss:$12 sps:$4 sm:$0xff]  }
  0x84   : > { %862 = vmatprep.subr.bf16.mxu1 %v4486_v18  ;;  %v4521_v45 = vld [vmem:[#allocation5 + $0x138] ss:$12 sps:$4 sm:$0xff]   ;;  %v4526_v49 = vld [vmem:[#allocation5 + $0x120] ss:$12 sps:$4 sm:$0xff]   ;;  %v4527_v50 = vld [vmem:[#allocation5 + $0x68] ss:$12 sps:$4 sm:$0xff]  }
  0x85   : > { %v4523_v47 = vld [vmem:[#allocation5 + $0x124] ss:$12 sps:$4 sm:$0xff]   ;;  %v4528_v51 = vld [vmem:[#allocation5 + $0x10c] ss:$12 sps:$4 sm:$0xff]   ;;  %v4531_v53 = vld [vmem:[#allocation5 + $0x108] ss:$12 sps:$4 sm:$0xff]  }
  0x86   : > { %822 = vmatpush1.bf16.msra.mxu0 %v4488_v19  ;;  %v4530_v52 = vld [vmem:[#allocation5 + $0x110] ss:$12 sps:$4 sm:$0xff]   ;;  %v4533_v55 = vld [vmem:[#allocation5 + $0xf4] ss:$12 sps:$4 sm:$0xff]   ;;  %v4535_v57 = vld [vmem:[#allocation5 + $0xf8] ss:$12 sps:$4 sm:$0xff]  }
  0x87   : > { %863 = vmatpush1.bf16.msra.mxu1 %v4489_v20  ;;  %823 = vmatprep.subr.bf16.mxu0 %v4490_v21  ;;  %v4532_v54 = vld [vmem:[#allocation5 + $0x50] ss:$12 sps:$4 sm:$0xff]   ;;  %v4537_v60 = vld [vmem:[#allocation5 + $0x38] ss:$12 sps:$4 sm:$0xff]   ;;  %v4540_v62 = vld [vmem:[#allocation5 + $0xe0] ss:$12 sps:$4 sm:$0xff]  }
  0x88   : > { %864 = vmatprep.subr.bf16.mxu1 %v4492_v22  ;;  %v328_v56 = vld [vmem:[%s5285_s1 + $0x8] sm:$0xff]  ;;  %v4542_v1 = vld [vmem:[#allocation5 + $0x20] ss:$12 sps:$4 sm:$0xff]   ;;  %vm2332_vm2 = vcmask 1043456   ;;  %vm2316_vm4 = vcmask 64512   ;;  %s325_s26 = scalar_lea.vmem [#allocation11], %s4360_s10 }
  0x89   : > { %v5305_v58 = vpack.c.bf16 %v328_v56, %v328_v56  ;;  %v4536_v59 = vld [vmem:[#allocation5 + $0xf0] ss:$12 sps:$4 sm:$0xff]   ;;  %v4541_v63 = vld [vmem:[#allocation5 + $0xd8] ss:$12 sps:$4 sm:$0xff]   ;;  %v4545_v3 = vld [vmem:[#allocation5 + $0xc8] ss:$12 sps:$4 sm:$0xff]  }
  0x8a   : > { %824 = vmatpush1.bf16.msra.mxu0 %v4494_v23  ;;  %v4538_v61 = vld [vmem:[#allocation5 + $0xdc] ss:$12 sps:$4 sm:$0xff]   ;;  %v4543_v2 = vld [vmem:[#allocation5 + $0xc4] ss:$12 sps:$4 sm:$0xff]   ;;  %v4546_v4 = vld [vmem:[#allocation5 + $0xc0] ss:$12 sps:$4 sm:$0xff]  }
  0x8b   : > { %865 = vmatpush1.bf16.msra.mxu1 %v4495_v24  ;;  %825 = vmatprep.subr.bf16.mxu0 %v4496_v25  ;;  %v4547_v5 = vld [vmem:[#allocation5 + $0x8] ss:$12 sps:$4 sm:$0xff]   ;;  %v4550_v7 = vld [vmem:[#allocation7 + $0xac] ss:$12 sps:$4 sm:$0xff]   ;;  %v4551_v10 = vld [vmem:[#allocation5 + $0x230] ss:$12 sps:$4 sm:$0xff]  }
  0x8c   : > { %866 = vmatprep.subr.bf16.mxu1 %v4498_v26  ;;  %845 = vmatprep.mubr.bf16.mxu0 %v5305_v58  ;;  %v327_v6 = vld [vmem:[%s5285_s1] sm:$0xff]  ;;  %v4555_v14 = vld [vmem:[#allocation5 + $0x218] ss:$12 sps:$4 sm:$0xff]   ;;  %s4361_s30 = smul.u32 384, %s5142_s27  ;;  %s3634_s8 = sshll.u32 %s325_s26, 4  ;;  %s5537_s8 = int_to_ptr.vmem [resolvable:$true] %s3634_s8 }
  0x8d   : > { %v5310_v8 = vpack.c.bf16 %v327_v6, %v327_v6  ;;  %v4548_v9 = vld [vmem:[#allocation7 + $0xa8] ss:$12 sps:$4 sm:$0xff]   ;;  %v4552_v13 = vld [vmem:[#allocation7 + $0x90] ss:$12 sps:$4 sm:$0xff]   ;;  %v4556_v16 = vld [vmem:[#allocation7 + $0x78] ss:$12 sps:$4 sm:$0xff]  }
  0x8e   : > { %826 = vmatpush1.bf16.msra.mxu0 %v4500_v27  ;;  %v4554_v12 = vld [vmem:[#allocation7 + $0x94] ss:$12 sps:$4 sm:$0xff]   ;;  %v4558_v15 = vld [vmem:[#allocation7 + $0x7c] ss:$12 sps:$4 sm:$0xff]   ;;  %v4562_v18 = vld [vmem:[#allocation7 + $0x64] ss:$12 sps:$4 sm:$0xff]   ;;  %s5535_s18 = scalar_lea.hbm %s5584_s6, %s4361_s30 }
  0x8f   : > { %867 = vmatpush1.bf16.msra.mxu1 %v4501_v28  ;;  %827 = vmatprep.subr.bf16.mxu0 %v4502_v29  ;;  %v4559_v17 = vld [vmem:[#allocation5 + $0x200] ss:$12 sps:$4 sm:$0xff]   ;;  %v4563_v20 = vld [vmem:[#allocation5 + $0x1e8] ss:$12 sps:$4 sm:$0xff]   ;;  %v4567_v23 = vld [vmem:[#allocation5 + $0x1d0] ss:$12 sps:$4 sm:$0xff]  }
  0x90   : > { %868 = vmatprep.subr.bf16.mxu1 %v4504_v30  ;;  %v4560_v19 = vld [vmem:[#allocation7 + $0x60] ss:$12 sps:$4 sm:$0xff]   ;;  %v4564_v22 = vld [vmem:[#allocation7 + $0x48] ss:$12 sps:$4 sm:$0xff]   ;;  %v4568_v25 = vld [vmem:[#allocation7 + $0x30] ss:$12 sps:$4 sm:$0xff]  }
  0x91   : > { %v4566_v21 = vld [vmem:[#allocation7 + $0x4c] ss:$12 sps:$4 sm:$0xff]   ;;  %v4570_v24 = vld [vmem:[#allocation7 + $0x34] ss:$12 sps:$4 sm:$0xff]   ;;  %v4574_v27 = vld [vmem:[#allocation7 + $0x1c] ss:$12 sps:$4 sm:$0xff]  }
  0x92   : > { %828 = vmatpush1.bf16.msra.mxu0 %v4506_v31  ;;  %v4571_v26 = vld [vmem:[#allocation5 + $0x1b8] ss:$12 sps:$4 sm:$0xff]   ;;  %v4575_v29 = vld [vmem:[#allocation5 + $0x1a0] ss:$12 sps:$4 sm:$0xff]   ;;  %v4610_v56 = vld [vmem:[#allocation7 + $0xf0] ss:$12 sps:$4 sm:$0xff]  }
  0x93   : > { %869 = vmatpush1.bf16.msra.mxu1 %v4507_v32  ;;  %829 = vmatprep.subr.bf16.mxu0 %v4508_v33  ;;  %v4572_v28 = vld [vmem:[#allocation7 + $0x18] ss:$12 sps:$4 sm:$0xff]   ;;  %v4576_v31 = vld [vmem:[#allocation7] ss:$12 sps:$4 sm:$0xff]   ;;  %v4579_v32 = vld [vmem:[#allocation5 + $0x188] ss:$12 sps:$4 sm:$0xff]  }
  0x94   : > { %4058 = vmatprep.subr.bf16.mxu1 %v4510_v35  ;;  %v4578_v30 = vld [vmem:[#allocation7 + $0x4] ss:$12 sps:$4 sm:$0xff]   ;;  %v4582_v33 = vld [vmem:[#allocation7 + $0x16c] ss:$12 sps:$4 sm:$0xff]   ;;  %v4580_v35 = vld [vmem:[#allocation7 + $0x168] ss:$12 sps:$4 sm:$0xff]  }
  0x95   : > { %v4585_v34 = vld [vmem:[#allocation7 + $0x22c] ss:$12 sps:$4 sm:$0xff]   ;;  %v4632_v6 = vld [vmem:[#allocation7 + $0x230] ss:$12 sps:$4 sm:$0xff]   ;;  %s3620_s17 = scalar_lea.sflag [#allocation4], %s5279_s7  ;;  %s5000_s27 = scalar_lea.vmem %s5537_s8, 384 }
  0x96   : > { %887 = vmatmul.mubr.bf16.vlgmr.msra.gmra.mxu1 %v5301_v36  ;;  %830 = vmatpush2.bf16.msra.mxu0 %v4511_v37  ;;  %v4583_v37 = vld [vmem:[#allocation7 + $0x228] ss:$12 sps:$4 sm:$0xff]   ;;  %p5001_p8 = scmp.ne.s32.totalorder %s5537_s8, %s5000_s27  ;;  %p5605_p7 = scmp.ne.s32.totalorder %s5594_s12, 0 }
  0x97   : > { %4059 = vmatpush3.bf16.msra.mxu1 %v4512_v38  ;;  %831 = vmatprep.subr.bf16.mxu0 %v4513_v39  ;;  %v4588_v38 = vld [vmem:[#allocation7 + $0x154] ss:$12 sps:$4 sm:$0xff]   ;;  %s5085_s11 = smov [#allocation11]  }
  0x98   : > { %4060 = vmatprep.subr.bf16.mxu1 %v4515_v40  ;;  %927 = vmatprep.mubr.bf16.mxu1 %v5305_v58  ;;  %v4591_v39 = vld [vmem:[#allocation7 + $0x214] ss:$12 sps:$4 sm:$0xff]   ;;  %v4586_v40 = vld [vmem:[#allocation7 + $0x150] ss:$12 sps:$4 sm:$0xff]   ;;  %p5002_p10 = pnand %p5001_p8, %p5605_p7  ;;  %s5004_s29 = sshll.u32 %s5085_s11, 4  ;;  %s5005_s29 = int_to_ptr.vmem [resolvable:$false] %s5004_s29 }
  0x99   : > { %s5006_s10 = scalar_lea.vmem %s5005_s29, 768  ;;  %p5007_p0 = scmp.lt.s32.totalorder %s5537_s8, %s5005_s29 }
  0x9a   : > { %832 = vmatpush2.bf16.msra.mxu0 %v4516_v41  ;;  %v4589_v41 = vld [vmem:[#allocation7 + $0x210] ss:$12 sps:$4 sm:$0xff]   ;;  %p5003_p6 = pneg %p5002_p10  ;;  %p5008_p2 = scmp.lt.s32.totalorder %s5006_s10, %s5000_s27 }
  0x9b   : > { %4061 = vmatpush3.bf16.msra.mxu1 %v4517_v42  ;;  %833 = vmatprep.subr.bf16.mxu0 %v4518_v43  ;;  %v4594_v42 = vld [vmem:[#allocation7 + $0x13c] ss:$12 sps:$4 sm:$0xff]  }
  0x9c   : > { %4062 = vmatprep.subr.bf16.mxu1 %v4520_v44  ;;  %v4597_v43 = vld [vmem:[#allocation7 + $0x1fc] ss:$12 sps:$4 sm:$0xff]   ;;  %v4592_v44 = vld [vmem:[#allocation7 + $0x138] ss:$12 sps:$4 sm:$0xff]   ;;  %p5009_p9 = por %p5008_p2, %p5007_p0 }
  0x9e   : > { %834 = vmatpush2.bf16.msra.mxu0 %v4521_v45  ;;  %v4595_v45 = vld [vmem:[#allocation7 + $0x1f8] ss:$12 sps:$4 sm:$0xff]   ;;  %p5010_p11 = pnand %p5009_p9, %p5003_p6 }
  0x9f   : > { %4063 = vmatpush3.bf16.msra.mxu1 %v4522_v46  ;;  %835 = vmatprep.subr.bf16.mxu0 %v4523_v47  ;;  %v4600_v46 = vld [vmem:[#allocation7 + $0x124] ss:$12 sps:$4 sm:$0xff]  }
  0xa0   : > { %4064 = vmatprep.subr.bf16.mxu1 %v4525_v48  ;;  %v4603_v47 = vld [vmem:[#allocation7 + $0x1e4] ss:$12 sps:$4 sm:$0xff]   ;;  %v4598_v48 = vld [vmem:[#allocation7 + $0x120] ss:$12 sps:$4 sm:$0xff]  }
  0xa2   : > { %836 = vmatpush2.bf16.msra.mxu0 %v4526_v49  ;;  %v4601_v49 = vld [vmem:[#allocation7 + $0x1e0] ss:$12 sps:$4 sm:$0xff]  }
  0xa3   : > { %4065 = vmatpush3.bf16.msra.mxu1 %v4527_v50  ;;  %837 = vmatprep.subr.bf16.mxu0 %v4528_v51  ;;  %v4606_v50 = vld [vmem:[#allocation7 + $0x10c] ss:$12 sps:$4 sm:$0xff]  }
  0xa4   : > { %4066 = vmatprep.subr.bf16.mxu1 %v4530_v52  ;;  %v4609_v51 = vld [vmem:[#allocation7 + $0x1cc] ss:$12 sps:$4 sm:$0xff]   ;;  %v4604_v52 = vld [vmem:[#allocation7 + $0x108] ss:$12 sps:$4 sm:$0xff]  }
  0xa6   : > { %838 = vmatpush2.bf16.msra.mxu0 %v4531_v53  ;;  %v4607_v53 = vld [vmem:[#allocation7 + $0x1c8] ss:$12 sps:$4 sm:$0xff]  }
  0xa7   : > { %4067 = vmatpush3.bf16.msra.mxu1 %v4532_v54  ;;  %839 = vmatprep.subr.bf16.mxu0 %v4533_v55  ;;  %v4612_v54 = vld [vmem:[#allocation7 + $0xf4] ss:$12 sps:$4 sm:$0xff]  }
  0xa8   : > { %4068 = vmatprep.subr.bf16.mxu1 %v4535_v57  ;;  %v4615_v55 = vld [vmem:[#allocation7 + $0x1b4] ss:$12 sps:$4 sm:$0xff]   ;;  %v4613_v57 = vld [vmem:[#allocation7 + $0x1b0] ss:$12 sps:$4 sm:$0xff]  }
  0xaa   : > { %840 = vmatpush2.bf16.msra.mxu0 %v4536_v59  ;;  %v4618_v59 = vld [vmem:[#allocation7 + $0xdc] ss:$12 sps:$4 sm:$0xff]  }
  0xab   : > { %4069 = vmatpush3.bf16.msra.mxu1 %v4537_v60  ;;  %841 = vmatprep.subr.bf16.mxu0 %v4538_v61  ;;  %v4621_v60 = vld [vmem:[#allocation7 + $0x19c] ss:$12 sps:$4 sm:$0xff]   ;;  %v4616_v61 = vld [vmem:[#allocation7 + $0xd8] ss:$12 sps:$4 sm:$0xff]  }
  0xac   : > { %4070 = vmatprep.subr.bf16.mxu1 %v4540_v62  ;;  %v4619_v62 = vld [vmem:[#allocation7 + $0x198] ss:$12 sps:$4 sm:$0xff]  }
  0xae   : > { %842 = vmatpush2.bf16.msra.mxu0 %v4541_v63  ;;  %v4624_v63 = vld [vmem:[#allocation7 + $0xc4] ss:$12 sps:$4 sm:$0xff]  }
  0xaf   : > { %4071 = vmatpush3.bf16.msra.mxu1 %v4542_v1  ;;  %843 = vmatprep.subr.bf16.mxu0 %v4543_v2  ;;  %v4627_v1 = vld [vmem:[#allocation7 + $0x184] ss:$12 sps:$4 sm:$0xff]   ;;  %v4622_v2 = vld [vmem:[#allocation7 + $0xc0] ss:$12 sps:$4 sm:$0xff]  }
  0xb0   : > { %4072 = vmatprep.subr.bf16.mxu1 %v4545_v3  ;;  %v4625_v3 = vld [vmem:[#allocation7 + $0x180] ss:$12 sps:$4 sm:$0xff]  }
  0xb2   : > { %844 = vmatpush2.bf16.msra.mxu0 %v4546_v4  ;;  %v4628_v4 = vld [vmem:[#allocation7 + $0x170] ss:$12 sps:$4 sm:$0xff]  }
  0xb3   : > { %4073 = vmatpush3.bf16.msra.mxu1 %v4547_v5  ;;  %4206 = vmatprep.subr.bf16.mxu0 %v5082_v11  ;;  %v4629_v5 = vld [vmem:[#allocation7 + $0xb0] ss:$12 sps:$4 sm:$0xff]  }
  0xb4   : > { %1455 = vmatprep.subr.bf16.mxu1 %v4550_v7  ;;  %v4630_v7 = vld [vmem:[#allocation7 + $0x158] ss:$12 sps:$4 sm:$0xff]  }
  0xb5   : > { %846 = vmatmul.mubr.bf16.vlgmr.msra.gmra.mxu0 %v5310_v8 }
  0xb6   : > { %928 = vmatmul.mubr.bf16.vlgmr.msra.gmra.mxu1 %v5310_v8  ;;  %4207 = vmatpush3.bf16.msra.mxu0 %v4551_v10  ;;  %v4635_v10 = vld [vmem:[#allocation7 + $0x218] ss:$12 sps:$4 sm:$0xff]  }
  0xb7   : > { %1456 = vmatpush1.bf16.msra.mxu1 %v4548_v9  ;;  %4208 = vmatprep.subr.bf16.mxu0 %v5082_v11  ;;  %v4631_v9 = vld [vmem:[#allocation7 + $0x98] ss:$12 sps:$4 sm:$0xff]  }
  0xb8   : > { %1457 = vmatprep.subr.bf16.mxu1 %v4554_v12  ;;  %4222 = vmatprep.mubr.msk.bf16.mxu0 %vm5083_vm0, %v5082_v11  ;;  %v4633_v12 = vld [vmem:[#allocation7 + $0x140] ss:$12 sps:$4 sm:$0xff]  }
  0xb9   : > { %1487 = vmatprep.mubr.bf16.mxu1 %v5305_v58 }
  0xba   : > { %4209 = vmatpush3.bf16.msra.mxu0 %v4555_v14  ;;  %v4638_v14 = vld [vmem:[#allocation7 + $0x200] ss:$12 sps:$4 sm:$0xff]  }
  0xbb   : > { %1458 = vmatpush1.bf16.msra.mxu1 %v4552_v13  ;;  %4210 = vmatprep.subr.bf16.mxu0 %v5082_v11  ;;  %v4634_v13 = vld [vmem:[#allocation7 + $0x80] ss:$12 sps:$4 sm:$0xff]  }
  0xbc   : > { %1459 = vmatprep.subr.bf16.mxu1 %v4558_v15  ;;  %v4636_v15 = vld [vmem:[#allocation7 + $0x128] ss:$12 sps:$4 sm:$0xff]  }
  0xbe   : > { %4211 = vmatpush3.bf16.msra.mxu0 %v4559_v17  ;;  %v4641_v17 = vld [vmem:[#allocation7 + $0x1e8] ss:$12 sps:$4 sm:$0xff]  }
  0xbf   : > { %1460 = vmatpush1.bf16.msra.mxu1 %v4556_v16  ;;  %4212 = vmatprep.subr.bf16.mxu0 %v5082_v11  ;;  %v4637_v16 = vld [vmem:[#allocation7 + $0x68] ss:$12 sps:$4 sm:$0xff]  }
  0xc0   : > { %1461 = vmatprep.subr.bf16.mxu1 %v4562_v18  ;;  %v4639_v18 = vld [vmem:[#allocation7 + $0x110] ss:$12 sps:$4 sm:$0xff]  }
  0xc2   : > { %4213 = vmatpush3.bf16.msra.mxu0 %v4563_v20  ;;  %v4642_v20 = vld [vmem:[#allocation7 + $0xf8] ss:$12 sps:$4 sm:$0xff]  }
  0xc3   : > { %1462 = vmatpush1.bf16.msra.mxu1 %v4560_v19  ;;  %4214 = vmatprep.subr.bf16.mxu0 %v5082_v11  ;;  %v4640_v19 = vld [vmem:[#allocation7 + $0x50] ss:$12 sps:$4 sm:$0xff]  }
  0xc4   : > { %1463 = vmatprep.subr.bf16.mxu1 %v4566_v21  ;;  %v4644_v21 = vld [vmem:[#allocation7 + $0x1d0] ss:$12 sps:$4 sm:$0xff]  }
  0xc6   : > { %4215 = vmatpush3.bf16.msra.mxu0 %v4567_v23  ;;  %v4647_v23 = vld [vmem:[#allocation7 + $0x1b8] ss:$12 sps:$4 sm:$0xff]  }
  0xc7   : > { %1464 = vmatpush1.bf16.msra.mxu1 %v4564_v22  ;;  %4216 = vmatprep.subr.bf16.mxu0 %v5082_v11  ;;  %v4643_v22 = vld [vmem:[#allocation7 + $0x38] ss:$12 sps:$4 sm:$0xff]  }
  0xc8   : > { %1465 = vmatprep.subr.bf16.mxu1 %v4570_v24  ;;  %v4645_v24 = vld [vmem:[#allocation7 + $0xe0] ss:$12 sps:$4 sm:$0xff]  }
  0xca   : > { %4217 = vmatpush3.bf16.msra.mxu0 %v4571_v26  ;;  %v4650_v26 = vld [vmem:[#allocation7 + $0x1a0] ss:$12 sps:$4 sm:$0xff]  }
  0xcb   : > { %1466 = vmatpush1.bf16.msra.mxu1 %v4568_v25  ;;  %4218 = vmatprep.subr.bf16.mxu0 %v5082_v11  ;;  %v4646_v25 = vld [vmem:[#allocation7 + $0x20] ss:$12 sps:$4 sm:$0xff]  }
  0xcc   : > { %1467 = vmatprep.subr.bf16.mxu1 %v4574_v27  ;;  %v4648_v27 = vld [vmem:[#allocation7 + $0xc8] ss:$12 sps:$4 sm:$0xff]  }
  0xce   : > { %4219 = vmatpush3.bf16.msra.mxu0 %v4575_v29  ;;  %v4651_v29 = vld [vmem:[#allocation7 + $0x188] ss:$12 sps:$4 sm:$0xff]  }
  0xcf   : > { %1468 = vmatpush1.bf16.msra.mxu1 %v4572_v28  ;;  %4220 = vmatprep.subr.bf16.mxu0 %v5082_v11  ;;  %v4649_v28 = vld [vmem:[#allocation7 + $0x8] ss:$12 sps:$4 sm:$0xff]  }
  0xd0   : > { %1469 = vmatprep.subr.bf16.mxu1 %v4578_v30  ;;  %v4654_v30 = vld [vmem:[#allocation8 + $0xac] ss:$12 sps:$4 sm:$0xff]  }
  0xd2   : > { %4221 = vmatpush3.bf16.msra.mxu0 %v4579_v32  ;;  %v4652_v32 = vld [vmem:[#allocation8 + $0xa8] ss:$12 sps:$4 sm:$0xff]  }
  0xd3   : > { %1470 = vmatpush1.bf16.msra.mxu1 %v4576_v31  ;;  %1496 = vmatprep.subr.bf16.mxu0 %v4585_v34  ;;  %v4678_v31 = vld [vmem:[#allocation8 + $0x22c] ss:$12 sps:$4 sm:$0xff]   ;;  %v4657_v34 = vld [vmem:[#allocation8 + $0x94] ss:$12 sps:$4 sm:$0xff]  }
  0xd4   : > { %1471 = vmatprep.subr.bf16.mxu1 %v4582_v33  ;;  %v4676_v33 = vld [vmem:[#allocation8 + $0x228] ss:$12 sps:$4 sm:$0xff]  }
  0xd5   : > { %4223 = vmatmul.mubr.bf16.vlgmr.msra.gmra.mxu0 %v5301_v36 }
  0xd6   : > { %1497 = vmatpush1.bf16.msra.mxu0 %v4583_v37  ;;  %1528 = vmatprep.mubr.bf16.mxu0 %v5081_v0  ;;  %v4655_v37 = vld [vmem:[#allocation8 + $0x90] ss:$12 sps:$4 sm:$0xff]  }
  0xd7   : > { %1472 = vmatpush2.bf16.msra.mxu1 %v4580_v35  ;;  %1498 = vmatprep.subr.bf16.mxu0 %v4591_v39  ;;  %v4684_v35 = vld [vmem:[#allocation8 + $0x214] ss:$12 sps:$4 sm:$0xff]   ;;  %v4682_v39 = vld [vmem:[#allocation8 + $0x210] ss:$12 sps:$4 sm:$0xff]  }
  0xd8   : > { %1473 = vmatprep.subr.bf16.mxu1 %v4588_v38  ;;  %v4660_v38 = vld [vmem:[#allocation8 + $0x7c] ss:$12 sps:$4 sm:$0xff]  }
  0xda   : > { %1499 = vmatpush1.bf16.msra.mxu0 %v4589_v41  ;;  %v4658_v41 = vld [vmem:[#allocation8 + $0x78] ss:$12 sps:$4 sm:$0xff]  }
  0xdb   : > { %1474 = vmatpush2.bf16.msra.mxu1 %v4586_v40  ;;  %1500 = vmatprep.subr.bf16.mxu0 %v4597_v43  ;;  %v4690_v40 = vld [vmem:[#allocation8 + $0x1fc] ss:$12 sps:$4 sm:$0xff]   ;;  %v4663_v43 = vld [vmem:[#allocation8 + $0x64] ss:$12 sps:$4 sm:$0xff]  }
  0xdc   : > { %1475 = vmatprep.subr.bf16.mxu1 %v4594_v42  ;;  %v4688_v42 = vld [vmem:[#allocation8 + $0x1f8] ss:$12 sps:$4 sm:$0xff]  }
  0xde   : > { %1501 = vmatpush1.bf16.msra.mxu0 %v4595_v45  ;;  %v4661_v45 = vld [vmem:[#allocation8 + $0x60] ss:$12 sps:$4 sm:$0xff]  }
  0xdf   : > { %1476 = vmatpush2.bf16.msra.mxu1 %v4592_v44  ;;  %1502 = vmatprep.subr.bf16.mxu0 %v4603_v47  ;;  %v4696_v44 = vld [vmem:[#allocation8 + $0x1e4] ss:$12 sps:$4 sm:$0xff]   ;;  %v4666_v47 = vld [vmem:[#allocation8 + $0x4c] ss:$12 sps:$4 sm:$0xff]  }
  0xe0   : > { %1477 = vmatprep.subr.bf16.mxu1 %v4600_v46  ;;  %v4694_v46 = vld [vmem:[#allocation8 + $0x1e0] ss:$12 sps:$4 sm:$0xff]  }
  0xe2   : > { %1503 = vmatpush1.bf16.msra.mxu0 %v4601_v49  ;;  %v4664_v49 = vld [vmem:[#allocation8 + $0x48] ss:$12 sps:$4 sm:$0xff]  }
  0xe3   : > { %1478 = vmatpush2.bf16.msra.mxu1 %v4598_v48  ;;  %1504 = vmatprep.subr.bf16.mxu0 %v4609_v51  ;;  %v4702_v48 = vld [vmem:[#allocation8 + $0x1cc] ss:$12 sps:$4 sm:$0xff]   ;;  %v4669_v51 = vld [vmem:[#allocation8 + $0x34] ss:$12 sps:$4 sm:$0xff]  }
  0xe4   : > { %1479 = vmatprep.subr.bf16.mxu1 %v4606_v50  ;;  %v4700_v50 = vld [vmem:[#allocation8 + $0x1c8] ss:$12 sps:$4 sm:$0xff]  }
  0xe6   : > { %1505 = vmatpush1.bf16.msra.mxu0 %v4607_v53  ;;  %v4667_v53 = vld [vmem:[#allocation8 + $0x30] ss:$12 sps:$4 sm:$0xff]  }
  0xe7   : > { %1480 = vmatpush2.bf16.msra.mxu1 %v4604_v52  ;;  %1506 = vmatprep.subr.bf16.mxu0 %v4615_v55  ;;  %v4708_v52 = vld [vmem:[#allocation8 + $0x1b4] ss:$12 sps:$4 sm:$0xff]   ;;  %v4672_v55 = vld [vmem:[#allocation8 + $0x1c] ss:$12 sps:$4 sm:$0xff]  }
  0xe8   : > { %1481 = vmatprep.subr.bf16.mxu1 %v4612_v54  ;;  %v4706_v54 = vld [vmem:[#allocation8 + $0x1b0] ss:$12 sps:$4 sm:$0xff]  }
  0xea   : > { %1507 = vmatpush1.bf16.msra.mxu0 %v4613_v57  ;;  %v4670_v57 = vld [vmem:[#allocation8 + $0x18] ss:$12 sps:$4 sm:$0xff]  }
  0xeb   : > { %1482 = vmatpush2.bf16.msra.mxu1 %v4610_v56  ;;  %1508 = vmatprep.subr.bf16.mxu0 %v4621_v60  ;;  %v4714_v56 = vld [vmem:[#allocation8 + $0x19c] ss:$12 sps:$4 sm:$0xff]   ;;  %v4675_v60 = vld [vmem:[#allocation8 + $0x4] ss:$12 sps:$4 sm:$0xff]  }
  0xec   : > { %1483 = vmatprep.subr.bf16.mxu1 %v4618_v59  ;;  %v4712_v59 = vld [vmem:[#allocation8 + $0x198] ss:$12 sps:$4 sm:$0xff]  }
  0xee   : > { %1509 = vmatpush1.bf16.msra.mxu0 %v4619_v62  ;;  %v4673_v62 = vld [vmem:[#allocation8] ss:$12 sps:$4 sm:$0xff]  }
  0xef   : > { %1484 = vmatpush2.bf16.msra.mxu1 %v4616_v61  ;;  %1510 = vmatprep.subr.bf16.mxu0 %v4627_v1  ;;  %v4720_v61 = vld [vmem:[#allocation8 + $0x184] ss:$12 sps:$4 sm:$0xff]   ;;  %v4681_v1 = vld [vmem:[#allocation8 + $0x16c] ss:$12 sps:$4 sm:$0xff]  }
  0xf0   : > { %1485 = vmatprep.subr.bf16.mxu1 %v4624_v63  ;;  %v4718_v63 = vld [vmem:[#allocation8 + $0x180] ss:$12 sps:$4 sm:$0xff]  }
  0xf2   : > { %1511 = vmatpush1.bf16.msra.mxu0 %v4625_v3  ;;  %v4679_v3 = vld [vmem:[#allocation8 + $0x168] ss:$12 sps:$4 sm:$0xff]  }
  0xf3   : > { %1486 = vmatpush2.bf16.msra.mxu1 %v4622_v2  ;;  %4089 = vmatprep.subr.bf16.mxu0 %v4628_v4  ;;  %v4724_v2 = vld [vmem:[#allocation8 + $0x170] ss:$12 sps:$4 sm:$0xff]  }
  0xf4   : > { %4226 = vmatprep.subr.bf16.mxu1 %v5082_v11  ;;  %v4725_v4 = vld [vmem:[#allocation8 + $0xb0] ss:$12 sps:$4 sm:$0xff]  }
  0xf5   : > { %1529 = vmatmul.mubr.bf16.vlgmr.msra.gmra.mxu0 %v5301_v36 }
  0xf6   : > { %1488 = vmatmul.mubr.bf16.vlgmr.msra.gmra.mxu1 %v5310_v8  ;;  %4090 = vmatpush3.bf16.msra.mxu0 %v4629_v5  ;;  %v4687_v5 = vld [vmem:[#allocation8 + $0x154] ss:$12 sps:$4 sm:$0xff]  }
  0xf7   : > { %4227 = vmatpush3.bf16.msra.mxu1 %v4632_v6  ;;  %4091 = vmatprep.subr.bf16.mxu0 %v4630_v7  ;;  %v4726_v6 = vld [vmem:[#allocation8 + $0x158] ss:$12 sps:$4 sm:$0xff]   ;;  %v4685_v7 = vld [vmem:[#allocation8 + $0x150] ss:$12 sps:$4 sm:$0xff]  }
  0xf8   : > { %4228 = vmatprep.subr.bf16.mxu1 %v5082_v11  ;;  %1569 = vmatprep.mubr.bf16.mxu0 %v5305_v58 }
  0xf9   : > { %4242 = vmatprep.mubr.msk.bf16.mxu1 %vm5083_vm0, %v5082_v11 }
  0xfa   : > { %4092 = vmatpush3.bf16.msra.mxu0 %v4631_v9  ;;  %v4727_v9 = vld [vmem:[#allocation8 + $0x98] ss:$12 sps:$4 sm:$0xff]  }
  0xfb   : > { %4229 = vmatpush3.bf16.msra.mxu1 %v4635_v10  ;;  %4093 = vmatprep.subr.bf16.mxu0 %v4633_v12  ;;  %v4693_v10 = vld [vmem:[#allocation8 + $0x13c] ss:$12 sps:$4 sm:$0xff]   ;;  %v4728_v12 = vld [vmem:[#allocation8 + $0x140] ss:$12 sps:$4 sm:$0xff]  }
  0xfc   : > { %4230 = vmatprep.subr.bf16.mxu1 %v5082_v11 }
  0xfe   : > { %4094 = vmatpush3.bf16.msra.mxu0 %v4634_v13  ;;  %v4691_v13 = vld [vmem:[#allocation8 + $0x138] ss:$12 sps:$4 sm:$0xff]  }
  0xff   : > { %4231 = vmatpush3.bf16.msra.mxu1 %v4638_v14  ;;  %4095 = vmatprep.subr.bf16.mxu0 %v4636_v15  ;;  %v4699_v14 = vld [vmem:[#allocation8 + $0x124] ss:$12 sps:$4 sm:$0xff]   ;;  %v4729_v15 = vld [vmem:[#allocation8 + $0x80] ss:$12 sps:$4 sm:$0xff]  }
 0x100   : > { %4232 = vmatprep.subr.bf16.mxu1 %v5082_v11 }
 0x102   : > { %4096 = vmatpush3.bf16.msra.mxu0 %v4637_v16  ;;  %v4731_v16 = vld [vmem:[#allocation8 + $0x128] ss:$12 sps:$4 sm:$0xff]  }
 0x103   : > { %4233 = vmatpush3.bf16.msra.mxu1 %v4641_v17  ;;  %4097 = vmatprep.subr.bf16.mxu0 %v4639_v18  ;;  %v4697_v17 = vld [vmem:[#allocation8 + $0x120] ss:$12 sps:$4 sm:$0xff]   ;;  %v4732_v18 = vld [vmem:[#allocation8 + $0x68] ss:$12 sps:$4 sm:$0xff]  }
 0x104   : > { %4234 = vmatprep.subr.bf16.mxu1 %v5082_v11 }
 0x106   : > { %4098 = vmatpush3.bf16.msra.mxu0 %v4640_v19  ;;  %v4705_v19 = vld [vmem:[#allocation8 + $0x10c] ss:$12 sps:$4 sm:$0xff]  }
 0x107   : > { %4235 = vmatpush3.bf16.msra.mxu1 %v4644_v21  ;;  %4099 = vmatprep.subr.bf16.mxu0 %v4642_v20  ;;  %v4734_v20 = vld [vmem:[#allocation8 + $0x110] ss:$12 sps:$4 sm:$0xff]   ;;  %v4703_v21 = vld [vmem:[#allocation8 + $0x108] ss:$12 sps:$4 sm:$0xff]  }
 0x108   : > { %4236 = vmatprep.subr.bf16.mxu1 %v5082_v11 }
 0x10a   : > { %4100 = vmatpush3.bf16.msra.mxu0 %v4643_v22  ;;  %v4735_v22 = vld [vmem:[#allocation8 + $0x50] ss:$12 sps:$4 sm:$0xff]  }
 0x10b   : > { %4237 = vmatpush3.bf16.msra.mxu1 %v4647_v23  ;;  %4101 = vmatprep.subr.bf16.mxu0 %v4645_v24  ;;  %v4737_v23 = vld [vmem:[#allocation8 + $0xf8] ss:$12 sps:$4 sm:$0xff]   ;;  %v4709_v24 = vld [vmem:[#allocation8 + $0xf0] ss:$12 sps:$4 sm:$0xff]  }
 0x10c   : > { %4238 = vmatprep.subr.bf16.mxu1 %v5082_v11 }
 0x10e   : > { %4102 = vmatpush3.bf16.msra.mxu0 %v4646_v25  ;;  %v4738_v25 = vld [vmem:[#allocation8 + $0x38] ss:$12 sps:$4 sm:$0xff]  }
 0x10f   : > { %4239 = vmatpush3.bf16.msra.mxu1 %v4650_v26  ;;  %4103 = vmatprep.subr.bf16.mxu0 %v4648_v27  ;;  %v4717_v26 = vld [vmem:[#allocation8 + $0xdc] ss:$12 sps:$4 sm:$0xff]   ;;  %v4740_v27 = vld [vmem:[#allocation8 + $0xe0] ss:$12 sps:$4 sm:$0xff]  }
 0x110   : > { %4240 = vmatprep.subr.bf16.mxu1 %v5082_v11 }
 0x112   : > { %4104 = vmatpush3.bf16.msra.mxu0 %v4649_v28  ;;  %v4715_v28 = vld [vmem:[#allocation8 + $0xd8] ss:$12 sps:$4 sm:$0xff]  }
 0x113   : > { %4241 = vmatpush3.bf16.msra.mxu1 %v4651_v29  ;;  %2097 = vmatprep.subr.bf16.mxu0 %v4654_v30  ;;  %v4741_v29 = vld [vmem:[#allocation8 + $0x20] ss:$12 sps:$4 sm:$0xff]   ;;  %v4723_v30 = vld [vmem:[#allocation8 + $0xc4] ss:$12 sps:$4 sm:$0xff]  }
 0x114   : > { %2138 = vmatprep.subr.bf16.mxu1 %v4678_v31  ;;  %v4743_v31 = vld [vmem:[#allocation8 + $0xc8] ss:$12 sps:$4 sm:$0xff]  }
 0x115   : > { %1570 = vmatmul.mubr.bf16.vlgmr.msra.gmra.mxu0 %v5310_v8 }
 0x116   : > { %4243 = vmatmul.mubr.bf16.vlgmr.msra.gmra.mxu1 %v5301_v36  ;;  %2098 = vmatpush1.bf16.msra.mxu0 %v4652_v32  ;;  %v4721_v32 = vld [vmem:[#allocation8 + $0xc0] ss:$12 sps:$4 sm:$0xff]  }
 0x117   : > { %2139 = vmatpush1.bf16.msra.mxu1 %v4676_v33  ;;  %2099 = vmatprep.subr.bf16.mxu0 %v4657_v34  ;;  %v4744_v33 = vld [vmem:[#allocation8 + $0x8] ss:$12 sps:$4 sm:$0xff]   ;;  %v4730_v34 = vld [vmem:[#allocation8 + $0x230] ss:$12 sps:$4 sm:$0xff]  }
 0x118   : > { %2140 = vmatprep.subr.bf16.mxu1 %v4684_v35  ;;  %2170 = vmatprep.mubr.bf16.mxu1 %v5081_v0 }
 0x119   : > { %2129 = vmatprep.mubr.bf16.mxu0 %v5305_v58 }
 0x11a   : > { %2100 = vmatpush1.bf16.msra.mxu0 %v4655_v37  ;;  %v4733_v37 = vld [vmem:[#allocation8 + $0x218] ss:$12 sps:$4 sm:$0xff]  }
 0x11b   : > { %2141 = vmatpush1.bf16.msra.mxu1 %v4682_v39  ;;  %2101 = vmatprep.subr.bf16.mxu0 %v4660_v38 }
 0x11c   : > { %2142 = vmatprep.subr.bf16.mxu1 %v4690_v40  ;;  %v4736_v40 = vld [vmem:[#allocation8 + $0x200] ss:$12 sps:$4 sm:$0xff]  }
 0x11e   : > { %2102 = vmatpush1.bf16.msra.mxu0 %v4658_v41 }
 0x11f   : > { %2143 = vmatpush1.bf16.msra.mxu1 %v4688_v42  ;;  %2103 = vmatprep.subr.bf16.mxu0 %v4663_v43  ;;  %v4739_v42 = vld [vmem:[#allocation8 + $0x1e8] ss:$12 sps:$4 sm:$0xff]   ;;  %v4745_v43 = vld [vmem:[#allocation8 + $0x1b8] ss:$12 sps:$4 sm:$0xff]  }
 0x120   : > { %2144 = vmatprep.subr.bf16.mxu1 %v4696_v44  ;;  %v4746_v44 = vld [vmem:[#allocation8 + $0x1a0] ss:$12 sps:$4 sm:$0xff]  }
 0x122   : > { %2104 = vmatpush1.bf16.msra.mxu0 %v4661_v45  ;;  %v4747_v45 = vld [vmem:[#allocation8 + $0x188] ss:$12 sps:$4 sm:$0xff]  }
 0x123   : > { %2145 = vmatpush1.bf16.msra.mxu1 %v4694_v46  ;;  %2105 = vmatprep.subr.bf16.mxu0 %v4666_v47 }
 0x124   : > { %2146 = vmatprep.subr.bf16.mxu1 %v4702_v48 }
 0x126   : > { %2106 = vmatpush1.bf16.msra.mxu0 %v4664_v49 }
 0x127   : > { %2147 = vmatpush1.bf16.msra.mxu1 %v4700_v50  ;;  %2107 = vmatprep.subr.bf16.mxu0 %v4669_v51 }
 0x128   : > { %2148 = vmatprep.subr.bf16.mxu1 %v4708_v52 }
 0x12a   : > { %2108 = vmatpush1.bf16.msra.mxu0 %v4667_v53 }
 0x12b   : > { %2149 = vmatpush1.bf16.msra.mxu1 %v4706_v54  ;;  %2109 = vmatprep.subr.bf16.mxu0 %v4672_v55 }
 0x12c   : > { %2150 = vmatprep.subr.bf16.mxu1 %v4714_v56 }
 0x12e   : > { %2110 = vmatpush1.bf16.msra.mxu0 %v4670_v57 }
 0x12f   : > { %2151 = vmatpush1.bf16.msra.mxu1 %v4712_v59  ;;  %2111 = vmatprep.subr.bf16.mxu0 %v4675_v60 }
 0x130   : > { %2152 = vmatprep.subr.bf16.mxu1 %v4720_v61 }
 0x132   : > { %2112 = vmatpush1.bf16.msra.mxu0 %v4673_v62 }
 0x133   : > { %2153 = vmatpush1.bf16.msra.mxu1 %v4718_v63  ;;  %2113 = vmatprep.subr.bf16.mxu0 %v4681_v1 }
 0x134   : > { %4120 = vmatprep.subr.bf16.mxu1 %v4724_v2 }
 0x136   : > { %2171 = vmatmul.mubr.bf16.vlgmr.msra.gmra.mxu1 %v5301_v36  ;;  %2114 = vmatpush2.bf16.msra.mxu0 %v4679_v3 }
 0x137   : > { %4121 = vmatpush3.bf16.msra.mxu1 %v4725_v4  ;;  %2115 = vmatprep.subr.bf16.mxu0 %v4687_v5 }
 0x138   : > { %4122 = vmatprep.subr.bf16.mxu1 %v4726_v6  ;;  %2211 = vmatprep.mubr.bf16.mxu1 %v5305_v58  ;;  %v4711_v58 = vld [vmem:[#allocation8 + $0xf4] ss:$12 sps:$4 sm:$0xff]  }
 0x13a   : > { %2116 = vmatpush2.bf16.msra.mxu0 %v4685_v7 }
 0x13b   : > { %4123 = vmatpush3.bf16.msra.mxu1 %v4727_v9  ;;  %2117 = vmatprep.subr.bf16.mxu0 %v4693_v10 }
 0x13c   : > { %4124 = vmatprep.subr.bf16.mxu1 %v4728_v12 }
 0x13e   : > { %2118 = vmatpush2.bf16.msra.mxu0 %v4691_v13 }
 0x13f   : > { %4125 = vmatpush3.bf16.msra.mxu1 %v4729_v15  ;;  %2119 = vmatprep.subr.bf16.mxu0 %v4699_v14 }
 0x140   : > { %4126 = vmatprep.subr.bf16.mxu1 %v4731_v16 }
 0x142   : > { %2120 = vmatpush2.bf16.msra.mxu0 %v4697_v17 }
 0x143   : > { %4127 = vmatpush3.bf16.msra.mxu1 %v4732_v18  ;;  %2121 = vmatprep.subr.bf16.mxu0 %v4705_v19 }
 0x144   : > { %4128 = vmatprep.subr.bf16.mxu1 %v4734_v20 }
 0x146   : > { %2122 = vmatpush2.bf16.msra.mxu0 %v4703_v21 }
 0x147   : > { %4129 = vmatpush3.bf16.msra.mxu1 %v4735_v22  ;;  %2123 = vmatprep.subr.bf16.mxu0 %v4711_v58 }
 0x148   : > { %4130 = vmatprep.subr.bf16.mxu1 %v4737_v23 }
 0x14a   : > { %2124 = vmatpush2.bf16.msra.mxu0 %v4709_v24 }
 0x14b   : > { %4131 = vmatpush3.bf16.msra.mxu1 %v4738_v25  ;;  %2125 = vmatprep.subr.bf16.mxu0 %v4717_v26 }
 0x14c   : > { %4132 = vmatprep.subr.bf16.mxu1 %v4740_v27 }
 0x14e   : > { %2126 = vmatpush2.bf16.msra.mxu0 %v4715_v28 }
 0x14f   : > { %4133 = vmatpush3.bf16.msra.mxu1 %v4741_v29  ;;  %2127 = vmatprep.subr.bf16.mxu0 %v4723_v30 }
 0x150   : > { %4134 = vmatprep.subr.bf16.mxu1 %v4743_v31 }
 0x152   : > { %2128 = vmatpush2.bf16.msra.mxu0 %v4721_v32 }
 0x153   : > { %4135 = vmatpush3.bf16.msra.mxu1 %v4744_v33  ;;  %4246 = vmatprep.subr.bf16.mxu0 %v5082_v11 }
 0x154   : > { %4266 = vmatprep.subr.bf16.mxu1 %v5082_v11 }
 0x155   : > { %2130 = vmatmul.mubr.bf16.vlgmr.msra.gmra.mxu0 %v5310_v8 }
 0x156   : > { %v888_v35 = vpop.f32.mrf.mxu1  ;;  %2212 = vmatmul.mubr.bf16.vlgmr.msra.gmra.mxu1 %v5310_v8  ;;  %4247 = vmatpush3.bf16.msra.mxu0 %v4730_v34  ;;  %v4742_v8 = vld [vmem:[#allocation8 + $0x1d0] ss:$12 sps:$4 sm:$0xff]  }
 0x157   : > { %4262 = vmatprep.mubr.msk.bf16.mxu0 %vm5083_vm0, %v5082_v11  ;;  %4248 = vmatprep.subr.bf16.mxu0 %v5082_v11 }
 0x158   : > { %v890_v38 = vpop.f32.mrf.mxu1  ;;  %4268 = vmatprep.mubr.msk.bf16.mxu1 %vm5083_vm0, %v5082_v11 }
 0x15a   : > { %v892_v39 = vpop.f32.mrf.mxu1  ;;  %4249 = vmatpush3.bf16.msra.mxu0 %v4733_v37 }
 0x15b   : > { %4250 = vmatprep.subr.bf16.mxu0 %v5082_v11 }
 0x15c   : > { %v893_v41 = vpop.f32.mrf.mxu1 }
 0x15e   : > { %4251 = vmatpush3.bf16.msra.mxu0 %v4736_v40 }
 0x15f   : > { %4252 = vmatprep.subr.bf16.mxu0 %v5082_v11 }
 0x162   : > { %4253 = vmatpush3.bf16.msra.mxu0 %v4739_v42 }
 0x163   : > { %4254 = vmatprep.subr.bf16.mxu0 %v5082_v11 }
 0x166   : > { %4255 = vmatpush3.bf16.msra.mxu0 %v4742_v8 }
 0x167   : > { %4256 = vmatprep.subr.bf16.mxu0 %v5082_v11 }
 0x16a   : > { %4257 = vmatpush3.bf16.msra.mxu0 %v4745_v43 }
 0x16b   : > { %4258 = vmatprep.subr.bf16.mxu0 %v5082_v11 }
 0x16e   : > { %4259 = vmatpush3.bf16.msra.mxu0 %v4746_v44 }
 0x16f   : > { %4260 = vmatprep.subr.bf16.mxu0 %v5082_v11 }
 0x172   : > { %4261 = vmatpush3.bf16.msra.mxu0 %v4747_v45 }
 0x173   : > { %4314 = vmatprep.subr.bf16.mxu0 %v5082_v11 }
 0x175   : > { %v847_v46 = vpop.f32.mrf.mxu0  ;;  %4263 = vmatmul.mubr.bf16.vlgmr.msra.gmra.mxu0 %v5301_v36 }
 0x176   : > { %v4074_v47 = vpop.f32.mrf.mxu1  ;;  %v889_v48 = vadd.f32 %v888_v35, %v847_v46  ;;  %4316 = vmatprep.mubr.msk.bf16.mxu0 %vm5083_vm0, %v5082_v11 }
 0x177   : > { %v849_v49 = vpop.f32.mrf.mxu0 }
 0x178   : > { %v4075_v50 = vpop.f32.mrf.mxu1  ;;  %v5365_v51 = vadd.f32 %v890_v38, %v849_v49  ;;  %v2264_v13 = vpack.c.bf16 %v889_v48, %v889_v48  ;;  %v2259_v48 = vlaneseq }
 0x179   : > { %v4076_v52 = vadd.f32 %v4075_v50, %v4074_v47  ;;  %v851_v53 = vpop.f32.mrf.mxu0 }
 0x17a   : > { %v4077_v54 = vpop.f32.mrf.mxu1  ;;  %v5396_v49 = vshrl.u32 %v2259_v48, 7  ;;  %v2262_v50 = vand.u32 127, %v2259_v48 }
 0x17b   : > { %v852_v55 = vpop.f32.mrf.mxu0 }
 0x17c   : > { %v4078_v56 = vpop.f32.mrf.mxu1  ;;  %vm5399_vm3 = vcmp.le.s32.totalorder %v2262_v50, %v5396_v49 }
 0x195   : > { %v969_v57 = vpop.f32.mrf.mxu0 }
 0x196   : > { %v970_v59 = vadd.f32 %v4076_v52, %v969_v57 }
 0x197   : > { %v4224_v60 = vpop.f32.mrf.mxu0 }
 0x198   : > { %v5381_v25 = vpack.c.bf16 %v970_v59, %v970_v59 }
 0x199   : > { %v972_v61 = vpop.f32.mrf.mxu0 }
 0x19b   : > { %v4225_v62 = vpop.f32.mrf.mxu0 }
 0x1b5   : > { %v1530_v36 = vpop.f32.mrf.mxu0 }
 0x1b6   : > { %v1489_v63 = vpop.f32.mrf.mxu1 }
 0x1b7   : > { %v1531_v1 = vadd.f32 %v1530_v36, %v1489_v63  ;;  %v1532_v3 = vpop.f32.mrf.mxu0 }
 0x1b8   : > { %v1491_v2 = vpop.f32.mrf.mxu1 }
 0x1b9   : > { %v2265_v4 = vpack.c.bf16 %v1531_v1, %v1531_v1  ;;  %v5367_v5 = vadd.f32 %v1532_v3, %v1491_v2  ;;  %v1534_v7 = vpop.f32.mrf.mxu0 }
 0x1ba   : > { %v1493_v6 = vpop.f32.mrf.mxu1 }
 0x1bb   : > { %v2272_v9 = vsel %vm2267_vm1, %v2265_v4, 0  ;;  %2380 = vrot.lane.b32.xlu1 %v2265_v4, %s5084_s28  ;;  %v1535_v12 = vpop.f32.mrf.mxu0 }
 0x1bc   : > { %v1494_v10 = vpop.f32.mrf.mxu1  ;;  %4267 = vmatpush3.bf16.xpose.msra.mxu1 %v2272_v9 }
 0x1bd   : > { %4272 = vmatprep.subr.bf16.mxu1 %v5082_v11 }
 0x1bf   : > { %2377 = vrot.lane.b32.xlu1 %v2264_v13, %s5084_s28 }
 0x1c3   : > { %4269 = vmatmul.mubr.msk.bf16.vlgmr.msra.gmra.mxu1 %vm2267_vm1, %v2264_v13 }
 0x1c4   : > { %4274 = vmatprep.mubr.msk.bf16.mxu1 %vm5083_vm0, %v5082_v11 }
 0x1d5   : > { %v4105_v14 = vpop.f32.mrf.mxu0 }
 0x1d6   : > { %v1611_v15 = vpop.f32.mrf.mxu1 }
 0x1d7   : > { %v4106_v16 = vpop.f32.mrf.mxu0 }
 0x1d8   : > { %v4244_v17 = vpop.f32.mrf.mxu1  ;;  %v4107_v18 = vadd.f32 %v4106_v16, %v4105_v14 }
 0x1d9   : > { %v4108_v20 = vpop.f32.mrf.mxu0 }
 0x1da   : > { %v1614_v19 = vpop.f32.mrf.mxu1  ;;  %v1612_v21 = vadd.f32 %v4107_v18, %v1611_v15 }
 0x1db   : > { %v4109_v58 = vpop.f32.mrf.mxu0 }
 0x1dc   : > { %v4245_v22 = vpop.f32.mrf.mxu1  ;;  %v5376_v23 = vpack.c.bf16 %v1612_v21, %v1612_v21 }
 0x1de   : > { %v2722_v24 = vsel %vm2267_vm1, %v5376_v23, 0 }
 0x1df   : > { %4315 = vmatpush3.bf16.xpose.msra.mxu0 %v2722_v24 }
 0x1e0   : > { %4326 = vmatprep.subr.bf16.mxu0 %v5082_v11 }
 0x1e6   : > { %4317 = vmatmul.mubr.msk.bf16.vlgmr.msra.gmra.mxu0 %vm2267_vm1, %v5381_v25 }
 0x1e7   : > { %4328 = vmatprep.mubr.msk.bf16.mxu0 %vm5083_vm0, %v5082_v11 }
 0x1f6   : > { %v2172_v26 = vpop.f32.mrf.mxu1 }
 0x1f8   : > { %v2174_v27 = vpop.f32.mrf.mxu1 }
 0x1fa   : > { %v2176_v28 = vpop.f32.mrf.mxu1 }
 0x1fc   : > { %v2177_v29 = vpop.f32.mrf.mxu1 }
 0x215   : > { %v2131_v30 = vpop.f32.mrf.mxu0 }
 0x216   : > { %v4136_v31 = vpop.f32.mrf.mxu1  ;;  %v2173_v32 = vadd.f32 %v2172_v26, %v2131_v30 }
 0x217   : > { %v2133_v33 = vpop.f32.mrf.mxu0 }
 0x218   : > { %v4137_v34 = vpop.f32.mrf.mxu1  ;;  %v5387_v35 = vpack.c.bf16 %v2173_v32, %v2173_v32  ;;  %v5389_v37 = vadd.f32 %v2174_v27, %v2133_v33 }
 0x219   : > { %v4138_v38 = vadd.f32 %v4137_v34, %v4136_v31  ;;  %v2135_v39 = vpop.f32.mrf.mxu0 }
 0x21a   : > { %v4139_v40 = vpop.f32.mrf.mxu1  ;;  %v2334_v41 = vsel %vm2332_vm2, %v5387_v35, 0 }
 0x21b   : > { %4273 = vmatpush3.bf16.msra.mxu1 %v2334_v41  ;;  %v2136_v42 = vpop.f32.mrf.mxu0 }
 0x21c   : > { %v4140_v8 = vpop.f32.mrf.mxu1  ;;  %4278 = vmatprep.subr.bf16.mxu1 %v5082_v11 }
 0x21d   : > { %v5436_v8 = vpack.c.bf16 %v5389_v37, %v5389_v37 }
 0x22d   : > { %v2381_v12 = vpop.permute.xlu1 %2380 }
 0x22e   : > { %v2386_v14 = vsel %vm2267_vm1, %v2381_v12, 0 }
 0x231   : > { %v2378_v15 = vpop.permute.xlu1 %2377 }
 0x235   : > { %v2253_v43 = vpop.f32.mrf.mxu0 }
 0x236   : > { %v5394_v44 = vadd.f32 %v4138_v38, %v2253_v43  ;;  %v2491_v43 = vpack.c.bf16 %v5365_v51, %v5365_v51 }
 0x237   : > { %v4264_v45 = vpop.f32.mrf.mxu0 }
 0x239   : > { %v2256_v46 = vpop.f32.mrf.mxu0 }
 0x23b   : > { %v4265_v47 = vpop.f32.mrf.mxu0 }
 0x283   : > { %v2308_v52 = vpop.f32.mrf.mxu1 }
 0x284   : > { %v2314_v54 = vmul.f32 0.05103104, %v2308_v52 }
 0x285   : > { %v4270_v55 = vpop.f32.mrf.mxu1 }
 0x286   : > { %v2315_v56 = vsel %vm5399_vm3, %v2314_v54, -1e+30 }
 0x287   : > { %v2311_v57 = vpop.f32.mrf.mxu1  ;;  %v2317_v59 = vsel %vm2316_vm4, %v2315_v56, -inf }
 0x288   : > { %2318 = vmax.xlane.f32.xlu0 %v2317_v59 }
 0x289   : > { %v4271_v60 = vpop.f32.mrf.mxu1 }
 0x2a6   : > { %v5406_v61 = vpop.f32.mrf.mxu0 }
 0x2a7   : > { %v2764_v57 = vmul.f32 0.05103104, %v5406_v61 }
 0x2a8   : > { %v4318_v62 = vpop.f32.mrf.mxu0 }
 0x2a9   : > { %v2765_v59 = vsel %vm5399_vm3, %v2764_v57, -1e+30 }
 0x2aa   : > { %v2761_v63 = vpop.f32.mrf.mxu0  ;;  %v2766_v60 = vsel %vm2316_vm4, %v2765_v59, -inf }
 0x2ac   : > { %v4319_v36 = vpop.f32.mrf.mxu0 }
 0x311   : > { %v2319_v1 = vpop.xlane.xlu0 %2318 }
 0x312   : > { %v2320_v2 = vsub.f32 %v2315_v56, %v2319_v1 }
 0x314   : > { %v2321_v3 = vmul.f32 1.442695, %v2320_v2 }
 0x316   : > { %4844 = vpow2.f32 %v2321_v3 }
 0x323   : > { %v4845_v4 = vpop.eup %4844 }
 0x324   : > { %v2323_v6 = vsel %vm2316_vm4, %v4845_v4, 0.0 }
 0x325   : > { %2324 = vadd.xlane.f32.xlu0 %v2323_v6 }
 0x3ae   : > { %v2325_v7 = vpop.xlane.xlu0 %2324 }
 0x3af   : > { %4846 = vrcp.f32 %v2325_v7 }
 0x3bc   : > { %v4847_v9 = vpop.eup %4846 }
 0x3bd   : > { %v2327_v10 = vmul.f32 %v4847_v9, %v4845_v4 }
 0x3bf   : > { %v2328_v13 = vpack.c.bf16 %v2327_v10, %v2327_v10 }
 0x3c1   : > { %4275 = vmatmul.mubr.msk.bf16.vlgmr.msra.gmra.mxu1 %vm2316_vm4, %v2328_v13 }
 0x3c2   : > { %4279 = vmatpush3.bf16.xpose.msra.mxu1 %v2386_v14  ;;  %4280 = vmatprep.mubr.msk.bf16.mxu1 %vm5083_vm0, %v5082_v11 }
 0x3c3   : > { %4284 = vmatprep.subr.bf16.mxu1 %v5082_v11 }
 0x3c9   : > { %4281 = vmatmul.mubr.msk.bf16.vlgmr.msra.gmra.mxu1 %vm2267_vm1, %v2378_v15 }
 0x3ca   : > { %4286 = vmatprep.mubr.msk.bf16.mxu1 %vm5083_vm0, %v5082_v11 }
 0x481   : > { %v5417_v16 = vpop.f32.mrf.mxu1 }
 0x483   : > { %v4276_v17 = vpop.f32.mrf.mxu1 }
 0x485   : > { %v2373_v18 = vpop.f32.mrf.mxu1 }
 0x487   : > { %v4277_v19 = vpop.f32.mrf.mxu1 }
 0x489   : > { %v2422_v20 = vpop.f32.mrf.mxu1 }
 0x48a   : > { %v2428_v21 = vmul.f32 0.05103104, %v2422_v20 }
 0x48b   : > { %v4282_v22 = vpop.f32.mrf.mxu1 }
 0x48c   : > { %v2429_v58 = vsel %vm5399_vm3, %v2428_v21, -1e+30 }
 0x48d   : > { %v2425_v24 = vpop.f32.mrf.mxu1  ;;  %v2430_v26 = vsel %vm2316_vm4, %v2429_v58, -inf }
 0x48e   : > { %2431 = vmax.xlane.f32.xlu0 %v2430_v26 }
 0x48f   : > { %v4283_v27 = vpop.f32.mrf.mxu1 }
 0x4a4   : > { %2443 = vrot.lane.b32.xlu0 %v5387_v35, %s5084_s28  ;;  %v2492_v35 = vpack.c.bf16 %v5367_v5, %v5367_v5  ;;  %v2558_v5 = vsel %vm2332_vm2, %v5436_v8, 0 }
 0x4a6   : > { %v2498_v42 = vsel %vm2267_vm1, %v2492_v35, 0 }
 0x517   : > { %v2432_v28 = vpop.xlane.xlu0 %2431 }
 0x518   : > { %v2433_v29 = vsub.f32 %v2429_v58, %v2432_v28 }
 0x51a   : > { %v2434_v30 = vmul.f32 1.442695, %v2433_v29 }
 0x51b   : > { %v2444_v31 = vpop.permute.xlu0 %2443 }
 0x51c   : > { %4848 = vpow2.f32 %v2434_v30  ;;  %v2449_v32 = vsel %vm2332_vm2, %v2444_v31, 0 }
 0x51d   : > { %4285 = vmatpush3.bf16.msra.mxu1 %v2449_v32 }
 0x51e   : > { %4290 = vmatprep.subr.bf16.mxu1 %v5082_v11 }
 0x529   : > { %v4849_v33 = vpop.eup %4848 }
 0x52a   : > { %v2436_v34 = vsel %vm2316_vm4, %v4849_v33, 0.0 }
 0x52b   : > { %2437 = vadd.xlane.f32.xlu1 %v2436_v34 }
 0x5b4   : > { %v2438_v38 = vpop.xlane.xlu1 %2437 }
 0x5b5   : > { %4850 = vrcp.f32 %v2438_v38 }
 0x5c2   : > { %v4851_v39 = vpop.eup %4850 }
 0x5c3   : > { %v2440_v40 = vmul.f32 %v4851_v39, %v4849_v33 }
 0x5c5   : > { %v2441_v41 = vpack.c.bf16 %v2440_v40, %v2440_v40 }
 0x5c7   : > { %4287 = vmatmul.mubr.msk.bf16.vlgmr.msra.gmra.mxu1 %vm2316_vm4, %v2441_v41 }
 0x5c8   : > { %4291 = vmatpush3.bf16.xpose.msra.mxu1 %v2498_v42  ;;  %4292 = vmatprep.mubr.msk.bf16.mxu1 %vm5083_vm0, %v5082_v11 }
 0x5c9   : > { %4296 = vmatprep.subr.bf16.mxu1 %v5082_v11 }
 0x5cf   : > { %4293 = vmatmul.mubr.msk.bf16.vlgmr.msra.gmra.mxu1 %vm2267_vm1, %v2491_v43 }
 0x5d0   : > { %4297 = vmatpush3.bf16.msra.mxu1 %v2558_v5  ;;  %4298 = vmatprep.mubr.msk.bf16.mxu1 %vm5083_vm0, %v5082_v11 }
 0x5d1   : > { %4302 = vmatprep.subr.bf16.mxu1 %v5082_v11 }
 0x687   : > { %v5446_v45 = vpop.f32.mrf.mxu1 }
 0x689   : > { %v4288_v46 = vpop.f32.mrf.mxu1 }
 0x68b   : > { %v2488_v47 = vpop.f32.mrf.mxu1 }
 0x68d   : > { %v4289_v37 = vpop.f32.mrf.mxu1 }
 0x68f   : > { %v2534_v48 = vpop.f32.mrf.mxu1 }
 0x690   : > { %v2540_v50 = vmul.f32 0.05103104, %v2534_v48 }
 0x691   : > { %v4294_v52 = vpop.f32.mrf.mxu1 }
 0x692   : > { %v2541_v51 = vsel %vm5399_vm3, %v2540_v50, -1e+30  ;;  %v2717_v50 = vpack.c.bf16 %v5394_v44, %v5394_v44 }
 0x693   : > { %v2537_v54 = vpop.f32.mrf.mxu1  ;;  %v2542_v55 = vsel %vm2316_vm4, %v2541_v51, -inf }
 0x694   : > { %2543 = vmax.xlane.f32.xlu0 %v2542_v55  ;;  %v2782_v44 = vsel %vm2332_vm2, %v2717_v50, 0 }
 0x695   : > { %v4295_v56 = vpop.f32.mrf.mxu1 }
 0x6aa   : > { %2601 = vrot.lane.b32.xlu0 %v2491_v43, %s5084_s28 }
 0x6c9   : > { %2767 = vmax.xlane.f32.xlu0 %v2766_v60 }
 0x71d   : > { %v2544_v62 = vpop.xlane.xlu0 %2543 }
 0x71e   : > { %v2545_v63 = vsub.f32 %v2541_v51, %v2544_v62 }
 0x720   : > { %v2546_v36 = vmul.f32 1.442695, %v2545_v63 }
 0x722   : > { %4852 = vpow2.f32 %v2546_v36 }
 0x72f   : > { %v4853_v1 = vpop.eup %4852 }
 0x730   : > { %v2548_v2 = vsel %vm2316_vm4, %v4853_v1, 0.0 }
 0x731   : > { %2549 = vadd.xlane.f32.xlu1 %v2548_v2 }
 0x742   : > { %2604 = vrot.lane.b32.xlu1 %v2492_v35, %s5084_s28 }
 0x746   : > { %2828 = vrot.lane.b32.xlu1 %v5376_v23, %s5084_s28  ;;  %v2602_v23 = vpop.permute.xlu0 %2601 }
 0x74a   : > { %2825 = vrot.lane.b32.xlu1 %v5381_v25, %s5084_s28 }
 0x752   : > { %v2768_v25 = vpop.xlane.xlu0 %2767 }
 0x753   : > { %v2769_v14 = vsub.f32 %v2765_v59, %v2768_v25  ;;  %v4754_v25 = vld [vmem:[#allocation10 + $0x78] ss:$12 sps:$4 sm:$0xff]  }
 0x755   : > { %v2770_v17 = vmul.f32 1.442695, %v2769_v14  ;;  %v4759_v14 = vld [vmem:[#allocation10 + $0x64] ss:$12 sps:$4 sm:$0xff]  }
 0x7ba   : > { %v2550_v61 = vpop.xlane.xlu1 %2549 }
 0x7bb   : > { %4854 = vrcp.f32 %v2550_v61 }
 0x7bc   : > { %4856 = vpow2.f32 %v2770_v17  ;;  %v4757_v17 = vld [vmem:[#allocation10 + $0x60] ss:$12 sps:$4 sm:$0xff]  }
 0x7be   : > { %v2605_v3 = vpop.permute.xlu1 %2604 }
 0x7bf   : > { %v2610_v13 = vsel %vm2267_vm1, %v2605_v3, 0 }
 0x7c2   : > { %v2829_v4 = vpop.permute.xlu1 %2828 }
 0x7c3   : > { %v2834_v6 = vsel %vm2267_vm1, %v2829_v4, 0  ;;  %v4748_v4 = vld [vmem:[#allocation10 + $0xa8] ss:$12 sps:$4 sm:$0xff]  }
 0x7c4   : > { %4327 = vmatpush3.bf16.xpose.msra.mxu0 %v2834_v6  ;;  %v4750_v6 = vld [vmem:[#allocation10 + $0xac] ss:$12 sps:$4 sm:$0xff]  }
 0x7c5   : > { %3454 = vmatprep.subr.bf16.mxu0 %v4750_v6 }
 0x7c6   : > { %v2826_v10 = vpop.permute.xlu1 %2825 }
 0x7c8   : > { %v4855_v7 = vpop.eup %4854 }
 0x7c9   : > { %v2552_v9 = vmul.f32 %v4855_v7, %v4853_v1  ;;  %v4857_v39 = vpop.eup %4856  ;;  %v4753_v7 = vld [vmem:[#allocation10 + $0x94] ss:$12 sps:$4 sm:$0xff]  }
 0x7ca   : > { %v2772_v35 = vsel %vm2316_vm4, %v4857_v39, 0.0 }
 0x7cb   : > { %4329 = vmatmul.mubr.msk.bf16.vlgmr.msra.gmra.mxu0 %vm2267_vm1, %v2826_v10  ;;  %v2553_v12 = vpack.c.bf16 %v2552_v9, %v2552_v9  ;;  %v4751_v9 = vld [vmem:[#allocation10 + $0x90] ss:$12 sps:$4 sm:$0xff]  }
 0x7cc   : > { %3455 = vmatpush1.bf16.msra.mxu0 %v4748_v4  ;;  %v4756_v10 = vld [vmem:[#allocation10 + $0x7c] ss:$12 sps:$4 sm:$0xff]  }
 0x7cd   : > { %4299 = vmatmul.mubr.msk.bf16.vlgmr.msra.gmra.mxu1 %vm2316_vm4, %v2553_v12  ;;  %3456 = vmatprep.subr.bf16.mxu0 %v4753_v7  ;;  %v4769_v12 = vld [vmem:[#allocation10 + $0x228] ss:$12 sps:$4 sm:$0xff]  }
 0x7ce   : > { %4303 = vmatpush3.bf16.xpose.msra.mxu1 %v2610_v13  ;;  %4304 = vmatprep.mubr.msk.bf16.mxu1 %vm5083_vm0, %v5082_v11  ;;  %v4771_v13 = vld [vmem:[#allocation10 + $0x22c] ss:$12 sps:$4 sm:$0xff]  }
 0x7cf   : > { %4308 = vmatprep.subr.bf16.mxu1 %v5082_v11 }
 0x7d0   : > { %3457 = vmatpush1.bf16.msra.mxu0 %v4751_v9 }
 0x7d1   : > { %3458 = vmatprep.subr.bf16.mxu0 %v4756_v10 }
 0x7d4   : > { %3459 = vmatpush1.bf16.msra.mxu0 %v4754_v25 }
 0x7d5   : > { %4305 = vmatmul.mubr.msk.bf16.vlgmr.msra.gmra.mxu1 %vm2267_vm1, %v2602_v23  ;;  %v4777_v23 = vld [vmem:[#allocation10 + $0x214] ss:$12 sps:$4 sm:$0xff]   ;;  %3460 = vmatprep.subr.bf16.mxu0 %v4759_v14 }
 0x7d6   : > { %4310 = vmatprep.mubr.msk.bf16.mxu1 %vm5083_vm0, %v5082_v11 }
 0x7d8   : > { %3461 = vmatpush1.bf16.msra.mxu0 %v4757_v17 }
 0x88b   : > { %v2870_v15 = vpop.f32.mrf.mxu0 }
 0x88c   : > { %v2876_v27 = vmul.f32 0.05103104, %v2870_v15  ;;  %v4775_v15 = vld [vmem:[#allocation10 + $0x210] ss:$12 sps:$4 sm:$0xff]  }
 0x88d   : > { %v5472_v18 = vpop.f32.mrf.mxu1  ;;  %v4330_v19 = vpop.f32.mrf.mxu0 }
 0x88e   : > { %v2877_v33 = vsel %vm5399_vm3, %v2876_v27, -1e+30  ;;  %v4762_v19 = vld [vmem:[#allocation10 + $0x4c] ss:$12 sps:$4 sm:$0xff]   ;;  %v4763_v27 = vld [vmem:[#allocation10 + $0x30] ss:$12 sps:$4 sm:$0xff]  }
 0x88f   : > { %v4300_v20 = vpop.f32.mrf.mxu1  ;;  %v2873_v21 = vpop.f32.mrf.mxu0  ;;  %v2878_v38 = vsel %vm2316_vm4, %v2877_v33, -inf  ;;  %3462 = vmatprep.subr.bf16.mxu0 %v4762_v19  ;;  %v4824_v19 = vld [vmem:[#allocation10 + $0x140] ss:$12 sps:$4 sm:$0xff]  }
 0x890   : > { %v4781_v20 = vld [vmem:[#allocation10 + $0x1f8] ss:$12 sps:$4 sm:$0xff]  }
 0x891   : > { %v2597_v22 = vpop.f32.mrf.mxu1  ;;  %v4331_v58 = vpop.f32.mrf.mxu0  ;;  %v4789_v21 = vld [vmem:[#allocation10 + $0x1e4] ss:$12 sps:$4 sm:$0xff]  }
 0x892   : > { %v4760_v22 = vld [vmem:[#allocation10 + $0x48] ss:$12 sps:$4 sm:$0xff]  }
 0x893   : > { %v4301_v24 = vpop.f32.mrf.mxu1  ;;  %v4765_v58 = vld [vmem:[#allocation10 + $0x34] ss:$12 sps:$4 sm:$0xff]   ;;  %3463 = vmatpush1.bf16.msra.mxu0 %v4760_v22  ;;  %v4825_v22 = vld [vmem:[#allocation10 + $0x230] ss:$12 sps:$4 sm:$0xff]  }
 0x894   : > { %v4787_v24 = vld [vmem:[#allocation10 + $0x1e0] ss:$12 sps:$4 sm:$0xff]   ;;  %3464 = vmatprep.subr.bf16.mxu0 %v4765_v58 }
 0x895   : > { %v2646_v26 = vpop.f32.mrf.mxu1  ;;  %v4826_v58 = vld [vmem:[#allocation10 + $0x80] ss:$12 sps:$4 sm:$0xff]  }
 0x896   : > { %v2652_v28 = vmul.f32 0.05103104, %v2646_v26  ;;  %v4795_v26 = vld [vmem:[#allocation10 + $0x1cc] ss:$12 sps:$4 sm:$0xff]  }
 0x897   : > { %v4306_v29 = vpop.f32.mrf.mxu1  ;;  %3465 = vmatpush1.bf16.msra.mxu0 %v4763_v27  ;;  %v4831_v27 = vld [vmem:[#allocation10 + $0x200] ss:$12 sps:$4 sm:$0xff]  }
 0x898   : > { %v2653_v30 = vsel %vm5399_vm3, %v2652_v28, -1e+30  ;;  %v4768_v28 = vld [vmem:[#allocation10 + $0x1c] ss:$12 sps:$4 sm:$0xff]  }
 0x899   : > { %v2649_v31 = vpop.f32.mrf.mxu1  ;;  %v2654_v32 = vsel %vm2316_vm4, %v2653_v30, -inf  ;;  %v4793_v29 = vld [vmem:[#allocation10 + $0x1c8] ss:$12 sps:$4 sm:$0xff]   ;;  %3466 = vmatprep.subr.bf16.mxu0 %v4768_v28  ;;  %v4832_v28 = vld [vmem:[#allocation10 + $0x50] ss:$12 sps:$4 sm:$0xff]  }
 0x89a   : > { %2655 = vmax.xlane.f32.xlu1 %v2654_v32  ;;  %v4766_v31 = vld [vmem:[#allocation10 + $0x18] ss:$12 sps:$4 sm:$0xff]  }
 0x89b   : > { %v4307_v34 = vpop.f32.mrf.mxu1  ;;  %v4774_v32 = vld [vmem:[#allocation10 + $0x4] ss:$12 sps:$4 sm:$0xff]   ;;  %3467 = vmatpush1.bf16.msra.mxu0 %v4766_v31 }
 0x89c   : > { %v4807_v34 = vld [vmem:[#allocation10 + $0x19c] ss:$12 sps:$4 sm:$0xff]   ;;  %3468 = vmatprep.subr.bf16.mxu0 %v4774_v32  ;;  %v4835_v31 = vld [vmem:[#allocation10 + $0x38] ss:$12 sps:$4 sm:$0xff]   ;;  %v4836_v32 = vld [vmem:[#allocation10 + $0xe0] ss:$12 sps:$4 sm:$0xff]  }
 0x89e   : > { %2879 = vmax.xlane.f32.xlu1 %v2878_v38  ;;  %v4772_v38 = vld [vmem:[#allocation10] ss:$12 sps:$4 sm:$0xff]  }
 0x89f   : > { %3469 = vmatpush1.bf16.msra.mxu0 %v4772_v38  ;;  %v4839_v38 = vld [vmem:[#allocation10 + $0xc8] ss:$12 sps:$4 sm:$0xff]  }
 0x8a2   : > { %2773 = vadd.xlane.f32.xlu1 %v2772_v35  ;;  %v4805_v35 = vld [vmem:[#allocation10 + $0x198] ss:$12 sps:$4 sm:$0xff]  }
 0x923   : > { %v2656_v40 = vpop.xlane.xlu1 %2655 }
 0x924   : > { %v2657_v41 = vsub.f32 %v2653_v30, %v2656_v40  ;;  %v4801_v30 = vld [vmem:[#allocation10 + $0x1b4] ss:$12 sps:$4 sm:$0xff]   ;;  %v4813_v40 = vld [vmem:[#allocation10 + $0x184] ss:$12 sps:$4 sm:$0xff]  }
 0x926   : > { %v2658_v42 = vmul.f32 1.442695, %v2657_v41  ;;  %v4778_v41 = vld [vmem:[#allocation10 + $0x168] ss:$12 sps:$4 sm:$0xff]  }
 0x927   : > { %v2880_v43 = vpop.xlane.xlu1 %2879 }
 0x928   : > { %4858 = vpow2.f32 %v2658_v42  ;;  %v2881_v5 = vsub.f32 %v2877_v33, %v2880_v43  ;;  %v4799_v33 = vld [vmem:[#allocation10 + $0x1b0] ss:$12 sps:$4 sm:$0xff]   ;;  %v4786_v42 = vld [vmem:[#allocation10 + $0x154] ss:$12 sps:$4 sm:$0xff]  }
 0x929   : > { %v4811_v43 = vld [vmem:[#allocation10 + $0x180] ss:$12 sps:$4 sm:$0xff]  }
 0x92a   : > { %v2882_v46 = vmul.f32 1.442695, %v2881_v5  ;;  %v4784_v5 = vld [vmem:[#allocation10 + $0x150] ss:$12 sps:$4 sm:$0xff]  }
 0x92b   : > { %v2774_v52 = vpop.xlane.xlu1 %2773 }
 0x92c   : > { %4860 = vpow2.f32 %v2882_v46  ;;  %v4792_v46 = vld [vmem:[#allocation10 + $0x13c] ss:$12 sps:$4 sm:$0xff]  }
 0x935   : > { %v4859_v47 = vpop.eup %4858 }
 0x936   : > { %v2660_v53 = vsel %vm2316_vm4, %v4859_v47, 0.0 }
 0x937   : > { %2661 = vadd.xlane.f32.xlu1 %v2660_v53  ;;  %v4798_v53 = vld [vmem:[#allocation10 + $0x124] ss:$12 sps:$4 sm:$0xff]  }
 0x939   : > { %v4861_v37 = vpop.eup %4860 }
 0x93a   : > { %v2884_v48 = vsel %vm2316_vm4, %v4861_v37, 0.0 }
 0x93b   : > { %2885 = vadd.xlane.f32.xlu0 %v2884_v48  ;;  %v4804_v48 = vld [vmem:[#allocation10 + $0x10c] ss:$12 sps:$4 sm:$0xff]  }
 0x948   : > { %2667 = vrot.lane.b32.xlu1 %v5436_v8, %s5084_s28 }
 0x951   : > { %2891 = vrot.lane.b32.xlu0 %v2717_v50, %s5084_s28  ;;  %v4802_v50 = vld [vmem:[#allocation10 + $0x108] ss:$12 sps:$4 sm:$0xff]  }
 0x9c0   : > { %v2662_v51 = vpop.xlane.xlu1 %2661 }
 0x9c1   : > { %4862 = vrcp.f32 %v2662_v51  ;;  %v4808_v51 = vld [vmem:[#allocation10 + $0xf0] ss:$12 sps:$4 sm:$0xff]  }
 0x9c2   : > { %4864 = vrcp.f32 %v2774_v52  ;;  %v4810_v52 = vld [vmem:[#allocation10 + $0xf4] ss:$12 sps:$4 sm:$0xff]  }
 0x9c4   : > { %v2668_v54 = vpop.permute.xlu1 %2667  ;;  %v2886_v56 = vpop.xlane.xlu0 %2885 }
 0x9c5   : > { %v2673_v55 = vsel %vm2332_vm2, %v2668_v54, 0  ;;  %4866 = vrcp.f32 %v2886_v56 }
 0x9c6   : > { %4309 = vmatpush3.bf16.msra.mxu1 %v2673_v55 }
 0x9c7   : > { %4320 = vmatprep.subr.bf16.mxu1 %v5082_v11 }
 0x9c8   : > { %v2892_v63 = vpop.permute.xlu0 %2891 }
 0x9c9   : > { %v2897_v2 = vsel %vm2332_vm2, %v2892_v63, 0  ;;  %v4819_v63 = vld [vmem:[#allocation10 + $0xc0] ss:$12 sps:$4 sm:$0xff]  }
 0x9ce   : > { %v4863_v57 = vpop.eup %4862 }
 0x9cf   : > { %v2664_v59 = vmul.f32 %v4863_v57, %v4859_v47  ;;  %v4865_v60 = vpop.eup %4864  ;;  %v4790_v47 = vld [vmem:[#allocation10 + $0x138] ss:$12 sps:$4 sm:$0xff]   ;;  %v4816_v57 = vld [vmem:[#allocation10 + $0xdc] ss:$12 sps:$4 sm:$0xff]  }
 0x9d0   : > { %v2776_v62 = vmul.f32 %v4865_v60, %v4857_v39  ;;  %v4780_v39 = vld [vmem:[#allocation10 + $0x16c] ss:$12 sps:$4 sm:$0xff]  }
 0x9d1   : > { %v2665_v8 = vpack.c.bf16 %v2664_v59, %v2664_v59  ;;  %3470 = vmatprep.subr.bf16.mxu0 %v4780_v39  ;;  %v4814_v59 = vld [vmem:[#allocation10 + $0xd8] ss:$12 sps:$4 sm:$0xff]  }
 0x9d2   : > { %v2777_v36 = vpack.c.bf16 %v2776_v62, %v2776_v62  ;;  %v4867_v1 = vpop.eup %4866  ;;  %3471 = vmatpush2.bf16.msra.mxu0 %v4778_v41  ;;  %v4821_v62 = vld [vmem:[#allocation10 + $0xc4] ss:$12 sps:$4 sm:$0xff]   ;;  %v4843_v41 = vld [vmem:[#allocation10 + $0x188] ss:$12 sps:$4 sm:$0xff]  }
 0x9d3   : > { %4311 = vmatmul.mubr.msk.bf16.vlgmr.msra.gmra.mxu1 %vm2316_vm4, %v2665_v8  ;;  %v2888_v61 = vmul.f32 %v4867_v1, %v4861_v37  ;;  %3472 = vmatprep.subr.bf16.mxu0 %v4786_v42  ;;  %v4796_v37 = vld [vmem:[#allocation10 + $0x120] ss:$12 sps:$4 sm:$0xff]   ;;  %v4817_v8 = vld [vmem:[#allocation10 + $0x170] ss:$12 sps:$4 sm:$0xff]   ;;  %v4840_v39 = vld [vmem:[#allocation10 + $0x1b8] ss:$12 sps:$4 sm:$0xff]  }
 0x9d4   : > { %4321 = vmatpush3.bf16.msra.mxu1 %v2782_v44  ;;  %4322 = vmatprep.mubr.msk.bf16.mxu1 %vm5083_vm0, %v5082_v11 }
 0x9d5   : > { %4332 = vmatprep.subr.bf16.mxu1 %v5082_v11  ;;  %v2889_v3 = vpack.c.bf16 %v2888_v61, %v2888_v61 }
 0x9d6   : > { %3473 = vmatpush2.bf16.msra.mxu0 %v4784_v5  ;;  %v3053_v5 = vld [vmem:[%s5583_s5] sm:$0x7] }
 0x9d7   : > { %3474 = vmatprep.subr.bf16.mxu0 %v4792_v46 }
 0x9da   : > { %3475 = vmatpush2.bf16.msra.mxu0 %v4790_v47  ;;  %v3061_v47 = vsub.s32 1, %v5396_v49 }
 0x9db   : > { %4323 = vmatmul.mubr.msk.bf16.vlgmr.msra.gmra.mxu1 %vm2316_vm4, %v2777_v36  ;;  %3476 = vmatprep.subr.bf16.mxu0 %v4798_v53 }
 0x9dc   : > { %4333 = vmatpush3.bf16.msra.mxu1 %v2897_v2  ;;  %4334 = vmatprep.mubr.msk.bf16.mxu1 %vm5083_vm0, %v5082_v11 }
 0x9dd   : > { %3495 = vmatprep.subr.bf16.mxu1 %v4771_v13 }
 0x9de   : > { %3477 = vmatpush2.bf16.msra.mxu0 %v4796_v37 }
 0x9df   : > { %3478 = vmatprep.subr.bf16.mxu0 %v4804_v48 }
 0x9e2   : > { %3479 = vmatpush2.bf16.msra.mxu0 %v4802_v50  ;;  %v3062_v50 = vrot.slane %v3053_v5, %v3061_v47 }
 0x9e3   : > { %4335 = vmatmul.mubr.msk.bf16.vlgmr.msra.gmra.mxu1 %vm2316_vm4, %v2889_v3  ;;  %3480 = vmatprep.subr.bf16.mxu0 %v4810_v52 }
 0x9e4   : > { %3527 = vmatprep.mubr.bf16.mxu1 %v5081_v0  ;;  %3496 = vmatpush1.bf16.msra.mxu1 %v4769_v12  ;;  %v4783_v0 = vld [vmem:[#allocation10 + $0x1fc] ss:$12 sps:$4 sm:$0xff]  }
 0x9e5   : > { %3497 = vmatprep.subr.bf16.mxu1 %v4777_v23  ;;  %v4818_v12 = vld [vmem:[#allocation10 + $0xb0] ss:$12 sps:$4 sm:$0xff]   ;;  %v4822_v23 = vld [vmem:[#allocation10 + $0x158] ss:$12 sps:$4 sm:$0xff]  }
 0x9e6   : > { %3481 = vmatpush2.bf16.msra.mxu0 %v4808_v51 }
 0x9e7   : > { %3482 = vmatprep.subr.bf16.mxu0 %v4816_v57 }
 0x9e8   : > { %3498 = vmatpush1.bf16.msra.mxu1 %v4775_v15 }
 0x9e9   : > { %3499 = vmatprep.subr.bf16.mxu1 %v4783_v0  ;;  %v4823_v0 = vld [vmem:[#allocation10 + $0x98] ss:$12 sps:$4 sm:$0xff]  }
 0x9ea   : > { %3483 = vmatpush2.bf16.msra.mxu0 %v4814_v59 }
 0x9eb   : > { %3484 = vmatprep.subr.bf16.mxu0 %v4821_v62 }
 0x9ec   : > { %3500 = vmatpush1.bf16.msra.mxu1 %v4781_v20 }
 0x9ed   : > { %3501 = vmatprep.subr.bf16.mxu1 %v4789_v21 }
 0x9ee   : > { %3485 = vmatpush2.bf16.msra.mxu0 %v4819_v63 }
 0x9ef   : > { %4338 = vmatprep.subr.bf16.mxu0 %v5082_v11 }
 0x9f0   : > { %3502 = vmatpush1.bf16.msra.mxu1 %v4787_v24  ;;  %v4827_v24 = vld [vmem:[#allocation10 + $0x128] ss:$12 sps:$4 sm:$0xff]  }
 0x9f1   : > { %3503 = vmatprep.subr.bf16.mxu1 %v4795_v26  ;;  %v4828_v26 = vld [vmem:[#allocation10 + $0x218] ss:$12 sps:$4 sm:$0xff]  }
 0x9f4   : > { %3504 = vmatpush1.bf16.msra.mxu1 %v4793_v29  ;;  %v4833_v29 = vld [vmem:[#allocation10 + $0xf8] ss:$12 sps:$4 sm:$0xff]  }
 0x9f5   : > { %3505 = vmatprep.subr.bf16.mxu1 %v4801_v30  ;;  %v4834_v30 = vld [vmem:[#allocation10 + $0x1e8] ss:$12 sps:$4 sm:$0xff]  }
 0x9f8   : > { %3506 = vmatpush1.bf16.msra.mxu1 %v4799_v33  ;;  %v4837_v33 = vld [vmem:[#allocation10 + $0x1d0] ss:$12 sps:$4 sm:$0xff]  }
 0x9f9   : > { %3507 = vmatprep.subr.bf16.mxu1 %v4807_v34  ;;  %v4838_v34 = vld [vmem:[#allocation10 + $0x20] ss:$12 sps:$4 sm:$0xff]  }
 0x9fc   : > { %3508 = vmatpush1.bf16.msra.mxu1 %v4805_v35  ;;  %v4841_v35 = vld [vmem:[#allocation10 + $0x8] ss:$12 sps:$4 sm:$0xff]  }
 0x9fd   : > { %3509 = vmatprep.subr.bf16.mxu1 %v4813_v40  ;;  %v4842_v40 = vld [vmem:[#allocation10 + $0x1a0] ss:$12 sps:$4 sm:$0xff]  }
 0xa00   : > { %3510 = vmatpush1.bf16.msra.mxu1 %v4811_v43  ;;  %v3057_v43 = vsub.s32 0, %v5396_v49 }
 0xa01   : > { %4175 = vmatprep.subr.bf16.mxu1 %v4817_v8  ;;  %v3065_v8 = vsub.s32 2, %v5396_v49 }
 0xa02   : > { %v3058_v37 = vrot.slane %v3053_v5, %v3057_v43 }
 0xa93   : > { %v2709_v54 = vpop.f32.mrf.mxu1 }
 0xa94   : > { %v4455_v4 = vpack.i.bf16 %v5446_v45, %v2709_v54 }
 0xa95   : > { %v4312_v55 = vpop.f32.mrf.mxu1 }
 0xa97   : > { %v2712_v56 = vpop.f32.mrf.mxu1 }
 0xa99   : > { %v4313_v60 = vpop.f32.mrf.mxu1 }
 0xa9b   : > { %v2818_v44 = vpop.f32.mrf.mxu1 }
 0xa9d   : > { %v4324_v36 = vpop.f32.mrf.mxu1 }
 0xa9f   : > { %v2821_v1 = vpop.f32.mrf.mxu1 }
 0xaa1   : > { %v4325_v2 = vpop.f32.mrf.mxu1 }
 0xaa3   : > { %v2933_v61 = vpop.f32.mrf.mxu1 }
 0xaa4   : > { %2948 = vrot.lane.b32.xlu1 %v2933_v61, %s5084_s28 }
 0xaa5   : > { %v4336_v3 = vpop.f32.mrf.mxu1 }
 0xaa7   : > { %v2936_v6 = vpop.f32.mrf.mxu1 }
 0xaa8   : > { %4456 = vrot.lane.b32.xlu1 %v4455_v4, %s5084_s28 }
 0xaa9   : > { %v4337_v7 = vpop.f32.mrf.mxu1 }
 0xb16   : > { %v2949_v9 = vpop.permute.xlu1 %2948 }
 0xb17   : > { %v2953_v10 = vsel %vm2267_vm1, %v2818_v44, %v2949_v9  ;;  %v3066_v44 = vrot.slane %v3053_v5, %v3065_v8 }
 0xb18   : > { %v5506_v13 = vpack.c.bf16 %v2953_v10, %v2953_v10 }
 0xb1a   : > { %3528 = vmatmul.mubr.bf16.vlgmr.msra.gmra.mxu1 %v5506_v13  ;;  %v4457_v25 = vpop.permute.xlu1 %4456 }
 0xb1b   : > { %4176 = vmatpush3.bf16.msra.mxu1 %v4818_v12  ;;  %v4459_v14 = vunpack.i.h.bf16 %v4457_v25  ;;  %v4458_v15 = vunpack.i.l.bf16 %v4457_v25 }
 0xb1c   : > { %4177 = vmatprep.subr.bf16.mxu1 %v4822_v23 }
 0xb1d   : > { %v2951_v45 = vsel %vm2267_vm1, %v5417_v16, %v4459_v14  ;;  %v2952_v17 = vsel %vm2267_vm1, %v5472_v18, %v4458_v15  ;;  %v4829_v16 = vld [vmem:[#allocation10 + $0x68] ss:$12 sps:$4 sm:$0xff]   ;;  %v4830_v18 = vld [vmem:[#allocation10 + $0x110] ss:$12 sps:$4 sm:$0xff]  }
 0xb1e   : > { %v2954_v20 = vpack.c.bf16 %v2951_v45, %v2951_v45  ;;  %v2955_v21 = vpack.c.bf16 %v2952_v17, %v2952_v17 }
 0xb1f   : > { %4178 = vmatpush3.bf16.msra.mxu1 %v4823_v0 }
 0xb20   : > { %3486 = vmatprep.mubr.bf16.mxu0 %v2955_v21  ;;  %3568 = vmatprep.mubr.bf16.mxu1 %v2955_v21 }
 0xb21   : > { %3487 = vmatmul.mubr.bf16.vlgmr.msra.gmra.mxu0 %v2954_v20  ;;  %4179 = vmatprep.subr.bf16.mxu1 %v4824_v19 }
 0xb22   : > { %4339 = vmatpush3.bf16.msra.mxu0 %v4825_v22  ;;  %4354 = vmatprep.mubr.msk.bf16.mxu0 %vm5083_vm0, %v5082_v11 }
 0xb23   : > { %4180 = vmatpush3.bf16.msra.mxu1 %v4826_v58  ;;  %4340 = vmatprep.subr.bf16.mxu0 %v5082_v11 }
 0xb24   : > { %4181 = vmatprep.subr.bf16.mxu1 %v4827_v24 }
 0xb26   : > { %4341 = vmatpush3.bf16.msra.mxu0 %v4828_v26 }
 0xb27   : > { %4182 = vmatpush3.bf16.msra.mxu1 %v4829_v16  ;;  %4342 = vmatprep.subr.bf16.mxu0 %v5082_v11 }
 0xb28   : > { %4183 = vmatprep.subr.bf16.mxu1 %v4830_v18 }
 0xb2a   : > { %4343 = vmatpush3.bf16.msra.mxu0 %v4831_v27 }
 0xb2b   : > { %4184 = vmatpush3.bf16.msra.mxu1 %v4832_v28  ;;  %4344 = vmatprep.subr.bf16.mxu0 %v5082_v11 }
 0xb2c   : > { %4185 = vmatprep.subr.bf16.mxu1 %v4833_v29 }
 0xb2e   : > { %4345 = vmatpush3.bf16.msra.mxu0 %v4834_v30 }
 0xb2f   : > { %4186 = vmatpush3.bf16.msra.mxu1 %v4835_v31  ;;  %4346 = vmatprep.subr.bf16.mxu0 %v5082_v11 }
 0xb30   : > { %4187 = vmatprep.subr.bf16.mxu1 %v4836_v32 }
 0xb32   : > { %4347 = vmatpush3.bf16.msra.mxu0 %v4837_v33 }
 0xb33   : > { %4188 = vmatpush3.bf16.msra.mxu1 %v4838_v34  ;;  %4348 = vmatprep.subr.bf16.mxu0 %v5082_v11 }
 0xb34   : > { %4189 = vmatprep.subr.bf16.mxu1 %v4839_v38 }
 0xb36   : > { %4349 = vmatpush3.bf16.msra.mxu0 %v4840_v39 }
 0xb37   : > { %4190 = vmatpush3.bf16.msra.mxu1 %v4841_v35  ;;  %4350 = vmatprep.subr.bf16.mxu0 %v5082_v11 }
 0xb3a   : > { %3569 = vmatmul.mubr.bf16.vlgmr.msra.gmra.mxu1 %v2954_v20  ;;  %4351 = vmatpush3.bf16.msra.mxu0 %v4842_v40 }
 0xb3b   : > { %4352 = vmatprep.subr.bf16.mxu0 %v5082_v11 }
 0xb3e   : > { %4353 = vmatpush3.bf16.msra.mxu0 %v4843_v41 }
 0xb41   : > { %4355 = vmatmul.mubr.bf16.vlgmr.msra.gmra.mxu0 %v5506_v13 }
 0xbda   : > { %v3529_v42 = vpop.f32.mrf.mxu1 }
 0xbdc   : > { %v3531_v46 = vpop.f32.mrf.mxu1 }
 0xbde   : > { %v3533_v53 = vpop.f32.mrf.mxu1 }
 0xbe0   : > { %v3534_v48 = vpop.f32.mrf.mxu1 }
 0xbe1   : > { %v3488_v52 = vpop.f32.mrf.mxu0 }
 0xbe2   : > { %v3489_v11 = vadd.f32 %v3488_v52, %v3058_v37 }
 0xbe3   : > { %v3490_v51 = vpop.f32.mrf.mxu0 }
 0xbe4   : > { %v3530_v54 = vadd.f32 %v3529_v42, %v3489_v11  ;;  %v3491_v55 = vadd.f32 %v3490_v51, %v3062_v50 }
 0xbe5   : > { %v3492_v56 = vpop.f32.mrf.mxu0 }
 0xbe6   : > { %3616 = vst [vmem:[%s325_s26] sm:$0xff] %v3530_v54  ;;  %v3532_v57 = vadd.f32 %v3531_v46, %v3491_v55 }
 0xbe7   : > { %v3493_v59 = vpop.f32.mrf.mxu0 }
 0xbe8   : > { %3617 = vst [vmem:[%s325_s26 + $0x8] sm:$0xff] %v3532_v57 }
 0xbfa   : > { %v4191_v60 = vpop.f32.mrf.mxu1 }
 0xbfc   : > { %v4192_v62 = vpop.f32.mrf.mxu1 }
 0xbfd   : > { %v4193_v63 = vadd.f32 %v4192_v62, %v4191_v60 }
 0xbfe   : > { %v4194_v36 = vpop.f32.mrf.mxu1 }
 0xbff   : > { %v3571_v1 = vadd.f32 %v4193_v63, %v3066_v44 }
 0xc00   : > { %v4195_v2 = vpop.f32.mrf.mxu1 }
 0xc01   : > { %v3610_v61 = vpop.f32.mrf.mxu0 }
 0xc02   : > { %v3611_v3 = vadd.f32 %v3610_v61, %v3571_v1 }
 0xc03   : > { %v4356_v49 = vpop.f32.mrf.mxu0 }
 0xc04   : > { %3618 = vst [vmem:[%s325_s26 + $0x10] sm:$0xff] %v3611_v3 }
 0xc05   : > { %v3613_v4 = vpop.f32.mrf.mxu0 }
 0xc06   : > { %5013 = shalt.err (!%p5010_p11)
}
 0xc07   : > { %s5014_s13 = scalar_lea.hbm %s5535_s18, 384  ;;  %s5018_s28 = scalar_lea.hbm %s5584_s6, 768 }
 0xc08   : > { %p5015_p12 = scmp.ne.s32.totalorder %s5535_s18, %s5014_s13  ;;  %p5019_p4 = scmp.lt.s32.totalorder %s5535_s18, %s5584_s6 }
 0xc09   : > { %p5020_p13 = scmp.lt.s32.totalorder %s5018_s28, %s5014_s13 }
 0xc0a   : > { %p5016_p1 = pnand %p5015_p12, %p5605_p7 }
 0xc0b   : > { %p5021_p5 = por %p5020_p13, %p5019_p4 }
 0xc0c   : > { %p5017_p3 = pneg %p5016_p1 }
 0xc0e   : > { %p5022_p8 = pnand %p5021_p5, %p5017_p3 }
 0xc10   : > { %5025 = shalt.err (!%p5022_p8)
}
 0xc11   : > { %4380 = dma.vmem_to_hbm [thread:$0]  (%p5605_p7), %s5537_s8, 384, %s5535_s18, %s3620_s17   ;;  %v4357_v6 = vpop.f32.mrf.mxu0 }
 0xc12 PF: > { %s3646_s26 = sand.u32 1, %s5060_s21   ;;  %p5606_p10 = scmp.ne.s32.totalorder %s5595_s16, 0 }
 0xc13   : > { %p5607_p6 = scmp.ge.s32.totalorder %s5072_s24, 2  ;;  %s3647_s30 = scalar_lea.sflag [#allocation4], %s3646_s26 }
 0xc15   : > { %p4400_p0 = pnand %p5607_p6, %p5606_p10 }
 0xc17   : > { %p4401_p2 = pneg %p4400_p0 }
 0xc19   : > { %5055 = dma.done.wait (%p4401_p2), %s3647_s30, 384  }
 0xc1a   : > { %5057 = vsyncadd (%p4401_p2), %s3647_s30, 4294966912  ;;  %p21_p9 = scmp.ge.s32.totalorder %s5222_s9, 4   ;;  %s5608_s21 = smov %s5064_s22 }
 0xc1b   : > { %s5609_s22 = smov %s5068_s23  ;;  %s5610_s23 = smov %s5233_s14 }
 0xc1c   : > { %s5611_s24 = smov %s5222_s9  ;;  %23 = sbr.rel (!%p21_p9) target bundleno = 9 (0x9), region = 105 }
 0xc21   :  { %3652 = vsyncpa [#allocation3], 1 }
 0xc22   :  { %3654 = vsyncpa [#allocation3 + $0x1], 1 }
 0xc23   :  { %3655 = vsyncpa [#allocation6], 1 }
 0xc24   :  { %3656 = vsyncpa [#allocation9], 1 }
 0xc25   :  { %3657 = vsyncpa [#allocation4], 1 }
 0xc26   :  { %3659 = vsyncpa [#allocation4 + $0x1], 1 }

</bundles_post_ra>
